<compile_context>
chip_gen: v6e
topology: v6e:2x2x1
jax: 0.10.0
libtpu: 0.0.40
codegen_flags: <defaults>
</compile_context>

<pallas_src>
import jax
import jax.numpy as jnp
from jax.experimental import pallas as pl
from jax.experimental.pallas import tpu as pltpu

_LANE = 128                      # lanes per vreg (fast axis)
_SUB = 8                         # sublanes per f32 vreg
_CHUNK = _SUB * _LANE            # 1024 batch elements per in-kernel chunk (one vreg per plane)
_MAX_TB = 8192                   # max batch elements per grid step (review: 2048-8192)

# Offsets into the flattened (151,) weight vector (PyTorch layout, row-major):
#   w1 (10,2) | b1 (10,) | w2 (10,10) | b2 (10,) | w3 (1,10) | b3 (1,)
_OFF_W1, _OFF_B1, _OFF_W2, _OFF_B2, _OFF_W3, _OFF_B3 = 0, 20, 30, 130, 140, 150
_N_PARAMS = 151


def _round_up(x, m):
    return ((x + m - 1) // m) * m


def _mlp_kernel(x_ref, w_ref, o_ref):
    """x_ref: (2, ts, 128) VMEM  |  w_ref: (151,) f32 SMEM  |  o_ref: (ts, 128) VMEM."""
    # Scalar weight/bias reads (sld on the scalar slot); hoisted out of the chunk loop.
    w1 = [[w_ref[_OFF_W1 + 2 * j + k] for k in range(2)] for j in range(10)]
    b1 = [w_ref[_OFF_B1 + j] for j in range(10)]
    w2 = [[w_ref[_OFF_W2 + 10 * j + k] for k in range(10)] for j in range(10)]
    b2 = [w_ref[_OFF_B2 + j] for j in range(10)]
    w3 = [w_ref[_OFF_W3 + k] for k in range(10)]
    b3 = w_ref[_OFF_B3]

    n_chunks = x_ref.shape[1] // _SUB    # static; one (8, 128) vreg per feature plane per chunk
    for c in range(n_chunks):            # static unroll; each chunk's values die at its store
        r = c * _SUB
        x0 = x_ref[0, r:r + _SUB, :]      # (8, 128) dense feature plane, batch in sublanes+lanes
        x1 = x_ref[1, r:r + _SUB, :]

        # layer_1: relu(W1 @ x + b1) -> 10 dense planes (K=2 scalar-splat FMAs on the VPU)
        h1 = [jnp.maximum(b1[j] + w1[j][0] * x0 + w1[j][1] * x1, 0.0) for j in range(10)]

        # layer_2: relu(W2 @ h1 + b2) -> 10 dense planes (K=10 scalar-splat FMAs)
        h2 = []
        for j in range(10):
            acc = b2[j] + w2[j][0] * h1[0]
            for k in range(1, 10):
                acc = acc + w2[j][k] * h1[k]
            h2.append(jnp.maximum(acc, 0.0))

        # layer_3: W3 @ h2 + b3 -> one dense plane (raw logits, no activation)
        out = b3 + w3[0] * h2[0]
        for k in range(1, 10):
            out = out + w3[k] * h2[k]

        o_ref[r:r + _SUB, :] = out        # dense, unmasked (8, 128) stores


def circle_model_v2(x, params):
    """Forward pass of CircleModelV2.

    x: (B, 2) float32
    params: PyTorch-layout weights: w1 (10,2), b1 (10,), w2 (10,10), b2 (10,),
            w3 (1,10), b3 (1,)
    returns: (B, 1) float32 raw logits (same as the PyTorch module).
    """
    B = x.shape[0]

    # --- tile sizing: chunk-aligned, >=2 grid steps when possible (v7x megacore), capped at _MAX_TB
    b_min = _round_up(B, _CHUNK)
    if b_min <= _CHUNK:
        tb = _CHUNK
    elif b_min <= _MAX_TB:
        tb = _round_up((b_min + 1) // 2, _CHUNK)   # split into 2 parallel grid steps
    else:
        tb = _MAX_TB
    b_pad = _round_up(b_min, tb)
    ts = tb // _LANE                               # sublane extent of one batch tile
    s_total = b_pad // _LANE

    # --- feature-major, lane-dense input layout: (2, S, 128); padded lanes compute finite
    #     garbage that is sliced off below (no cross-lane mixing in the kernel).
    # TODO(synk): on v5e this transpose+pad is an extra HBM pass; emitting x feature-major
    # upstream (or fusing it into the producer) would remove ~16 B/element of traffic.
    x_t = jnp.pad(x.astype(jnp.float32).T, ((0, 0), (0, b_pad - B)))
    x_t = x_t.reshape(2, s_total, _LANE)

    # --- all weights/biases as one flat SMEM vector (PyTorch layout preserved)
    wvec = jnp.concatenate([
        params["w1"].reshape(-1), params["b1"].reshape(-1),
        params["w2"].reshape(-1), params["b2"].reshape(-1),
        params["w3"].reshape(-1), params["b3"].reshape(-1),
    ]).astype(jnp.float32)                         # (151,)

    flops = 2 * (10 * 2 + 10 * 10 + 10 * 1) * b_pad          # 260 * b_pad
    bytes_accessed = 12 * b_pad + 4 * _N_PARAMS

    out = pl.pallas_call(
        _mlp_kernel,
        out_shape=jax.ShapeDtypeStruct((s_total, _LANE), jnp.float32),
        grid_spec=pltpu.PrefetchScalarGridSpec(
            num_scalar_prefetch=0,
            grid=(b_pad // tb,),
            in_specs=[
                pl.BlockSpec((2, ts, _LANE), lambda i: (0, i, 0)),      # batch tile of x
                pl.BlockSpec(memory_space=pltpu.MemorySpace.SMEM),      # flat weight vector
            ],
            out_specs=pl.BlockSpec((ts, _LANE), lambda i: (i, 0)),      # lane-dense output
        ),
        compiler_params=pltpu.CompilerParams(
            dimension_semantics=("parallel",),    # independent batch tiles; 2 TCs on v7x
        ),
        cost_estimate=pl.CostEstimate(flops=flops, transcendentals=0,
                                      bytes_accessed=bytes_accessed),
    )(x_t, wvec)

    return out.reshape(-1)[:B].reshape(B, 1)


def init_params(key):
    """Deterministic init mirroring nn.Linear's U(-1/sqrt(fan_in), 1/sqrt(fan_in)),
    stored in PyTorch layout: weight (out_features, in_features), bias (out_features,)."""
    ks = jax.random.split(key, 6)

    def linear(kw, kb, fan_in, fan_out):
        bound = 1.0 / (fan_in ** 0.5)
        w = jax.random.uniform(kw, (fan_out, fan_in), jnp.float32, -bound, bound)
        b = jax.random.uniform(kb, (fan_out,), jnp.float32, -bound, bound)
        return w, b

    w1, b1 = linear(ks[0], ks[1], 2, 10)
    w2, b2 = linear(ks[2], ks[3], 10, 10)
    w3, b3 = linear(ks[4], ks[5], 10, 1)
    return {"w1": w1, "b1": b1, "w2": w2, "b2": b2, "w3": w3, "b3": b3}


def _reference(x, p):
    h1 = jnp.maximum(x @ p["w1"].T + p["b1"], 0.0)
    h2 = jnp.maximum(h1 @ p["w2"].T + p["b2"], 0.0)
    return h2 @ p["w3"].T + p["b3"]


if __name__ == "__main__":
    key = jax.random.PRNGKey(0)
    k_x, k_p, k_x2 = jax.random.split(key, 3)
    params = init_params(k_p)

    # Small shape consistent with the module: (batch, 2) features; single tile, single chunk.
    x = jax.random.normal(k_x, (8, 2), jnp.float32)
    out = jax.block_until_ready(circle_model_v2(x, params))
    ref = _reference(x, params)
    assert out.shape == (8, 1)
    assert jnp.allclose(out, ref, atol=1e-5, rtol=1e-5), "mismatch vs reference (B=8)"

    # Irregular batch: exercises padding, multiple in-kernel chunks, and a 2-step parallel grid.
    x2 = jax.random.normal(k_x2, (2500, 2), jnp.float32)
    out2 = jax.block_until_ready(circle_model_v2(x2, params))
    ref2 = _reference(x2, params)
    assert out2.shape == (2500, 1)
    assert jnp.allclose(out2, ref2, atol=1e-5, rtol=1e-5), "mismatch vs reference (B=2500)"

    print("KERNEL_OK")
</pallas_src>

<mosaic_0001>
module attributes {stable_mosaic.version = 11 : i64} {
  func.func @_mlp_kernel(%arg0: i32, %arg1: memref<2x8x128xf32, #tpu.memory_space<vmem>>, %arg2: memref<151xf32, #tpu.memory_space<smem>>, %arg3: memref<8x128xf32, #tpu.memory_space<vmem>>) attributes {dimension_semantics = [#tpu.dimension_semantics<parallel>], iteration_bounds = array<i64: 1>, scalar_prefetch = 0 : i64, scratch_operands = 0 : i64, tpu.core_type = #tpu.core_type<tc>, window_params = [{transform_indices = @transform_0, window_bounds = array<i64: 2, 8, 128>}, {transform_indices = @transform_1, window_bounds = array<i64: 151>}, {transform_indices = @transform_2, window_bounds = array<i64: 8, 128>}]} {
    %c0 = arith.constant 0 : index
    %0 = memref.load %arg2[%c0] : memref<151xf32, #tpu.memory_space<smem>>
    %c1 = arith.constant 1 : index
    %1 = memref.load %arg2[%c1] : memref<151xf32, #tpu.memory_space<smem>>
    %c2 = arith.constant 2 : index
    %2 = memref.load %arg2[%c2] : memref<151xf32, #tpu.memory_space<smem>>
    %c3 = arith.constant 3 : index
    %3 = memref.load %arg2[%c3] : memref<151xf32, #tpu.memory_space<smem>>
    %c4 = arith.constant 4 : index
    %4 = memref.load %arg2[%c4] : memref<151xf32, #tpu.memory_space<smem>>
    %c5 = arith.constant 5 : index
    %5 = memref.load %arg2[%c5] : memref<151xf32, #tpu.memory_space<smem>>
    %c6 = arith.constant 6 : index
    %6 = memref.load %arg2[%c6] : memref<151xf32, #tpu.memory_space<smem>>
    %c7 = arith.constant 7 : index
    %7 = memref.load %arg2[%c7] : memref<151xf32, #tpu.memory_space<smem>>
    %c8 = arith.constant 8 : index
    %8 = memref.load %arg2[%c8] : memref<151xf32, #tpu.memory_space<smem>>
    %c9 = arith.constant 9 : index
    %9 = memref.load %arg2[%c9] : memref<151xf32, #tpu.memory_space<smem>>
    %c10 = arith.constant 10 : index
    %10 = memref.load %arg2[%c10] : memref<151xf32, #tpu.memory_space<smem>>
    %c11 = arith.constant 11 : index
    %11 = memref.load %arg2[%c11] : memref<151xf32, #tpu.memory_space<smem>>
    %c12 = arith.constant 12 : index
    %12 = memref.load %arg2[%c12] : memref<151xf32, #tpu.memory_space<smem>>
    %c13 = arith.constant 13 : index
    %13 = memref.load %arg2[%c13] : memref<151xf32, #tpu.memory_space<smem>>
    %c14 = arith.constant 14 : index
    %14 = memref.load %arg2[%c14] : memref<151xf32, #tpu.memory_space<smem>>
    %c15 = arith.constant 15 : index
    %15 = memref.load %arg2[%c15] : memref<151xf32, #tpu.memory_space<smem>>
    %c16 = arith.constant 16 : index
    %16 = memref.load %arg2[%c16] : memref<151xf32, #tpu.memory_space<smem>>
    %c17 = arith.constant 17 : index
    %17 = memref.load %arg2[%c17] : memref<151xf32, #tpu.memory_space<smem>>
    %c18 = arith.constant 18 : index
    %18 = memref.load %arg2[%c18] : memref<151xf32, #tpu.memory_space<smem>>
    %c19 = arith.constant 19 : index
    %19 = memref.load %arg2[%c19] : memref<151xf32, #tpu.memory_space<smem>>
    %c20 = arith.constant 20 : index
    %20 = memref.load %arg2[%c20] : memref<151xf32, #tpu.memory_space<smem>>
    %c21 = arith.constant 21 : index
    %21 = memref.load %arg2[%c21] : memref<151xf32, #tpu.memory_space<smem>>
    %c22 = arith.constant 22 : index
    %22 = memref.load %arg2[%c22] : memref<151xf32, #tpu.memory_space<smem>>
    %c23 = arith.constant 23 : index
    %23 = memref.load %arg2[%c23] : memref<151xf32, #tpu.memory_space<smem>>
    %c24 = arith.constant 24 : index
    %24 = memref.load %arg2[%c24] : memref<151xf32, #tpu.memory_space<smem>>
    %c25 = arith.constant 25 : index
    %25 = memref.load %arg2[%c25] : memref<151xf32, #tpu.memory_space<smem>>
    %c26 = arith.constant 26 : index
    %26 = memref.load %arg2[%c26] : memref<151xf32, #tpu.memory_space<smem>>
    %c27 = arith.constant 27 : index
    %27 = memref.load %arg2[%c27] : memref<151xf32, #tpu.memory_space<smem>>
    %c28 = arith.constant 28 : index
    %28 = memref.load %arg2[%c28] : memref<151xf32, #tpu.memory_space<smem>>
    %c29 = arith.constant 29 : index
    %29 = memref.load %arg2[%c29] : memref<151xf32, #tpu.memory_space<smem>>
    %c30 = arith.constant 30 : index
    %30 = memref.load %arg2[%c30] : memref<151xf32, #tpu.memory_space<smem>>
    %c31 = arith.constant 31 : index
    %31 = memref.load %arg2[%c31] : memref<151xf32, #tpu.memory_space<smem>>
    %c32 = arith.constant 32 : index
    %32 = memref.load %arg2[%c32] : memref<151xf32, #tpu.memory_space<smem>>
    %c33 = arith.constant 33 : index
    %33 = memref.load %arg2[%c33] : memref<151xf32, #tpu.memory_space<smem>>
    %c34 = arith.constant 34 : index
    %34 = memref.load %arg2[%c34] : memref<151xf32, #tpu.memory_space<smem>>
    %c35 = arith.constant 35 : index
    %35 = memref.load %arg2[%c35] : memref<151xf32, #tpu.memory_space<smem>>
    %c36 = arith.constant 36 : index
    %36 = memref.load %arg2[%c36] : memref<151xf32, #tpu.memory_space<smem>>
    %c37 = arith.constant 37 : index
    %37 = memref.load %arg2[%c37] : memref<151xf32, #tpu.memory_space<smem>>
    %c38 = arith.constant 38 : index
    %38 = memref.load %arg2[%c38] : memref<151xf32, #tpu.memory_space<smem>>
    %c39 = arith.constant 39 : index
    %39 = memref.load %arg2[%c39] : memref<151xf32, #tpu.memory_space<smem>>
    %c40 = arith.constant 40 : index
    %40 = memref.load %arg2[%c40] : memref<151xf32, #tpu.memory_space<smem>>
    %c41 = arith.constant 41 : index
    %41 = memref.load %arg2[%c41] : memref<151xf32, #tpu.memory_space<smem>>
    %c42 = arith.constant 42 : index
    %42 = memref.load %arg2[%c42] : memref<151xf32, #tpu.memory_space<smem>>
    %c43 = arith.constant 43 : index
    %43 = memref.load %arg2[%c43] : memref<151xf32, #tpu.memory_space<smem>>
    %c44 = arith.constant 44 : index
    %44 = memref.load %arg2[%c44] : memref<151xf32, #tpu.memory_space<smem>>
    %c45 = arith.constant 45 : index
    %45 = memref.load %arg2[%c45] : memref<151xf32, #tpu.memory_space<smem>>
    %c46 = arith.constant 46 : index
    %46 = memref.load %arg2[%c46] : memref<151xf32, #tpu.memory_space<smem>>
    %c47 = arith.constant 47 : index
    %47 = memref.load %arg2[%c47] : memref<151xf32, #tpu.memory_space<smem>>
    %c48 = arith.constant 48 : index
    %48 = memref.load %arg2[%c48] : memref<151xf32, #tpu.memory_space<smem>>
    %c49 = arith.constant 49 : index
    %49 = memref.load %arg2[%c49] : memref<151xf32, #tpu.memory_space<smem>>
    %c50 = arith.constant 50 : index
    %50 = memref.load %arg2[%c50] : memref<151xf32, #tpu.memory_space<smem>>
    %c51 = arith.constant 51 : index
    %51 = memref.load %arg2[%c51] : memref<151xf32, #tpu.memory_space<smem>>
    %c52 = arith.constant 52 : index
    %52 = memref.load %arg2[%c52] : memref<151xf32, #tpu.memory_space<smem>>
    %c53 = arith.constant 53 : index
    %53 = memref.load %arg2[%c53] : memref<151xf32, #tpu.memory_space<smem>>
    %c54 = arith.constant 54 : index
    %54 = memref.load %arg2[%c54] : memref<151xf32, #tpu.memory_space<smem>>
    %c55 = arith.constant 55 : index
    %55 = memref.load %arg2[%c55] : memref<151xf32, #tpu.memory_space<smem>>
    %c56 = arith.constant 56 : index
    %56 = memref.load %arg2[%c56] : memref<151xf32, #tpu.memory_space<smem>>
    %c57 = arith.constant 57 : index
    %57 = memref.load %arg2[%c57] : memref<151xf32, #tpu.memory_space<smem>>
    %c58 = arith.constant 58 : index
    %58 = memref.load %arg2[%c58] : memref<151xf32, #tpu.memory_space<smem>>
    %c59 = arith.constant 59 : index
    %59 = memref.load %arg2[%c59] : memref<151xf32, #tpu.memory_space<smem>>
    %c60 = arith.constant 60 : index
    %60 = memref.load %arg2[%c60] : memref<151xf32, #tpu.memory_space<smem>>
    %c61 = arith.constant 61 : index
    %61 = memref.load %arg2[%c61] : memref<151xf32, #tpu.memory_space<smem>>
    %c62 = arith.constant 62 : index
    %62 = memref.load %arg2[%c62] : memref<151xf32, #tpu.memory_space<smem>>
    %c63 = arith.constant 63 : index
    %63 = memref.load %arg2[%c63] : memref<151xf32, #tpu.memory_space<smem>>
    %c64 = arith.constant 64 : index
    %64 = memref.load %arg2[%c64] : memref<151xf32, #tpu.memory_space<smem>>
    %c65 = arith.constant 65 : index
    %65 = memref.load %arg2[%c65] : memref<151xf32, #tpu.memory_space<smem>>
    %c66 = arith.constant 66 : index
    %66 = memref.load %arg2[%c66] : memref<151xf32, #tpu.memory_space<smem>>
    %c67 = arith.constant 67 : index
    %67 = memref.load %arg2[%c67] : memref<151xf32, #tpu.memory_space<smem>>
    %c68 = arith.constant 68 : index
    %68 = memref.load %arg2[%c68] : memref<151xf32, #tpu.memory_space<smem>>
    %c69 = arith.constant 69 : index
    %69 = memref.load %arg2[%c69] : memref<151xf32, #tpu.memory_space<smem>>
    %c70 = arith.constant 70 : index
    %70 = memref.load %arg2[%c70] : memref<151xf32, #tpu.memory_space<smem>>
    %c71 = arith.constant 71 : index
    %71 = memref.load %arg2[%c71] : memref<151xf32, #tpu.memory_space<smem>>
    %c72 = arith.constant 72 : index
    %72 = memref.load %arg2[%c72] : memref<151xf32, #tpu.memory_space<smem>>
    %c73 = arith.constant 73 : index
    %73 = memref.load %arg2[%c73] : memref<151xf32, #tpu.memory_space<smem>>
    %c74 = arith.constant 74 : index
    %74 = memref.load %arg2[%c74] : memref<151xf32, #tpu.memory_space<smem>>
    %c75 = arith.constant 75 : index
    %75 = memref.load %arg2[%c75] : memref<151xf32, #tpu.memory_space<smem>>
    %c76 = arith.constant 76 : index
    %76 = memref.load %arg2[%c76] : memref<151xf32, #tpu.memory_space<smem>>
    %c77 = arith.constant 77 : index
    %77 = memref.load %arg2[%c77] : memref<151xf32, #tpu.memory_space<smem>>
    %c78 = arith.constant 78 : index
    %78 = memref.load %arg2[%c78] : memref<151xf32, #tpu.memory_space<smem>>
    %c79 = arith.constant 79 : index
    %79 = memref.load %arg2[%c79] : memref<151xf32, #tpu.memory_space<smem>>
    %c80 = arith.constant 80 : index
    %80 = memref.load %arg2[%c80] : memref<151xf32, #tpu.memory_space<smem>>
    %c81 = arith.constant 81 : index
    %81 = memref.load %arg2[%c81] : memref<151xf32, #tpu.memory_space<smem>>
    %c82 = arith.constant 82 : index
    %82 = memref.load %arg2[%c82] : memref<151xf32, #tpu.memory_space<smem>>
    %c83 = arith.constant 83 : index
    %83 = memref.load %arg2[%c83] : memref<151xf32, #tpu.memory_space<smem>>
    %c84 = arith.constant 84 : index
    %84 = memref.load %arg2[%c84] : memref<151xf32, #tpu.memory_space<smem>>
    %c85 = arith.constant 85 : index
    %85 = memref.load %arg2[%c85] : memref<151xf32, #tpu.memory_space<smem>>
    %c86 = arith.constant 86 : index
    %86 = memref.load %arg2[%c86] : memref<151xf32, #tpu.memory_space<smem>>
    %c87 = arith.constant 87 : index
    %87 = memref.load %arg2[%c87] : memref<151xf32, #tpu.memory_space<smem>>
    %c88 = arith.constant 88 : index
    %88 = memref.load %arg2[%c88] : memref<151xf32, #tpu.memory_space<smem>>
    %c89 = arith.constant 89 : index
    %89 = memref.load %arg2[%c89] : memref<151xf32, #tpu.memory_space<smem>>
    %c90 = arith.constant 90 : index
    %90 = memref.load %arg2[%c90] : memref<151xf32, #tpu.memory_space<smem>>
    %c91 = arith.constant 91 : index
    %91 = memref.load %arg2[%c91] : memref<151xf32, #tpu.memory_space<smem>>
    %c92 = arith.constant 92 : index
    %92 = memref.load %arg2[%c92] : memref<151xf32, #tpu.memory_space<smem>>
    %c93 = arith.constant 93 : index
    %93 = memref.load %arg2[%c93] : memref<151xf32, #tpu.memory_space<smem>>
    %c94 = arith.constant 94 : index
    %94 = memref.load %arg2[%c94] : memref<151xf32, #tpu.memory_space<smem>>
    %c95 = arith.constant 95 : index
    %95 = memref.load %arg2[%c95] : memref<151xf32, #tpu.memory_space<smem>>
    %c96 = arith.constant 96 : index
    %96 = memref.load %arg2[%c96] : memref<151xf32, #tpu.memory_space<smem>>
    %c97 = arith.constant 97 : index
    %97 = memref.load %arg2[%c97] : memref<151xf32, #tpu.memory_space<smem>>
    %c98 = arith.constant 98 : index
    %98 = memref.load %arg2[%c98] : memref<151xf32, #tpu.memory_space<smem>>
    %c99 = arith.constant 99 : index
    %99 = memref.load %arg2[%c99] : memref<151xf32, #tpu.memory_space<smem>>
    %c100 = arith.constant 100 : index
    %100 = memref.load %arg2[%c100] : memref<151xf32, #tpu.memory_space<smem>>
    %c101 = arith.constant 101 : index
    %101 = memref.load %arg2[%c101] : memref<151xf32, #tpu.memory_space<smem>>
    %c102 = arith.constant 102 : index
    %102 = memref.load %arg2[%c102] : memref<151xf32, #tpu.memory_space<smem>>
    %c103 = arith.constant 103 : index
    %103 = memref.load %arg2[%c103] : memref<151xf32, #tpu.memory_space<smem>>
    %c104 = arith.constant 104 : index
    %104 = memref.load %arg2[%c104] : memref<151xf32, #tpu.memory_space<smem>>
    %c105 = arith.constant 105 : index
    %105 = memref.load %arg2[%c105] : memref<151xf32, #tpu.memory_space<smem>>
    %c106 = arith.constant 106 : index
    %106 = memref.load %arg2[%c106] : memref<151xf32, #tpu.memory_space<smem>>
    %c107 = arith.constant 107 : index
    %107 = memref.load %arg2[%c107] : memref<151xf32, #tpu.memory_space<smem>>
    %c108 = arith.constant 108 : index
    %108 = memref.load %arg2[%c108] : memref<151xf32, #tpu.memory_space<smem>>
    %c109 = arith.constant 109 : index
    %109 = memref.load %arg2[%c109] : memref<151xf32, #tpu.memory_space<smem>>
    %c110 = arith.constant 110 : index
    %110 = memref.load %arg2[%c110] : memref<151xf32, #tpu.memory_space<smem>>
    %c111 = arith.constant 111 : index
    %111 = memref.load %arg2[%c111] : memref<151xf32, #tpu.memory_space<smem>>
    %c112 = arith.constant 112 : index
    %112 = memref.load %arg2[%c112] : memref<151xf32, #tpu.memory_space<smem>>
    %c113 = arith.constant 113 : index
    %113 = memref.load %arg2[%c113] : memref<151xf32, #tpu.memory_space<smem>>
    %c114 = arith.constant 114 : index
    %114 = memref.load %arg2[%c114] : memref<151xf32, #tpu.memory_space<smem>>
    %c115 = arith.constant 115 : index
    %115 = memref.load %arg2[%c115] : memref<151xf32, #tpu.memory_space<smem>>
    %c116 = arith.constant 116 : index
    %116 = memref.load %arg2[%c116] : memref<151xf32, #tpu.memory_space<smem>>
    %c117 = arith.constant 117 : index
    %117 = memref.load %arg2[%c117] : memref<151xf32, #tpu.memory_space<smem>>
    %c118 = arith.constant 118 : index
    %118 = memref.load %arg2[%c118] : memref<151xf32, #tpu.memory_space<smem>>
    %c119 = arith.constant 119 : index
    %119 = memref.load %arg2[%c119] : memref<151xf32, #tpu.memory_space<smem>>
    %c120 = arith.constant 120 : index
    %120 = memref.load %arg2[%c120] : memref<151xf32, #tpu.memory_space<smem>>
    %c121 = arith.constant 121 : index
    %121 = memref.load %arg2[%c121] : memref<151xf32, #tpu.memory_space<smem>>
    %c122 = arith.constant 122 : index
    %122 = memref.load %arg2[%c122] : memref<151xf32, #tpu.memory_space<smem>>
    %c123 = arith.constant 123 : index
    %123 = memref.load %arg2[%c123] : memref<151xf32, #tpu.memory_space<smem>>
    %c124 = arith.constant 124 : index
    %124 = memref.load %arg2[%c124] : memref<151xf32, #tpu.memory_space<smem>>
    %c125 = arith.constant 125 : index
    %125 = memref.load %arg2[%c125] : memref<151xf32, #tpu.memory_space<smem>>
    %c126 = arith.constant 126 : index
    %126 = memref.load %arg2[%c126] : memref<151xf32, #tpu.memory_space<smem>>
    %c127 = arith.constant 127 : index
    %127 = memref.load %arg2[%c127] : memref<151xf32, #tpu.memory_space<smem>>
    %c128 = arith.constant 128 : index
    %128 = memref.load %arg2[%c128] : memref<151xf32, #tpu.memory_space<smem>>
    %c129 = arith.constant 129 : index
    %129 = memref.load %arg2[%c129] : memref<151xf32, #tpu.memory_space<smem>>
    %c130 = arith.constant 130 : index
    %130 = memref.load %arg2[%c130] : memref<151xf32, #tpu.memory_space<smem>>
    %c131 = arith.constant 131 : index
    %131 = memref.load %arg2[%c131] : memref<151xf32, #tpu.memory_space<smem>>
    %c132 = arith.constant 132 : index
    %132 = memref.load %arg2[%c132] : memref<151xf32, #tpu.memory_space<smem>>
    %c133 = arith.constant 133 : index
    %133 = memref.load %arg2[%c133] : memref<151xf32, #tpu.memory_space<smem>>
    %c134 = arith.constant 134 : index
    %134 = memref.load %arg2[%c134] : memref<151xf32, #tpu.memory_space<smem>>
    %c135 = arith.constant 135 : index
    %135 = memref.load %arg2[%c135] : memref<151xf32, #tpu.memory_space<smem>>
    %c136 = arith.constant 136 : index
    %136 = memref.load %arg2[%c136] : memref<151xf32, #tpu.memory_space<smem>>
    %c137 = arith.constant 137 : index
    %137 = memref.load %arg2[%c137] : memref<151xf32, #tpu.memory_space<smem>>
    %c138 = arith.constant 138 : index
    %138 = memref.load %arg2[%c138] : memref<151xf32, #tpu.memory_space<smem>>
    %c139 = arith.constant 139 : index
    %139 = memref.load %arg2[%c139] : memref<151xf32, #tpu.memory_space<smem>>
    %c140 = arith.constant 140 : index
    %140 = memref.load %arg2[%c140] : memref<151xf32, #tpu.memory_space<smem>>
    %c141 = arith.constant 141 : index
    %141 = memref.load %arg2[%c141] : memref<151xf32, #tpu.memory_space<smem>>
    %c142 = arith.constant 142 : index
    %142 = memref.load %arg2[%c142] : memref<151xf32, #tpu.memory_space<smem>>
    %c143 = arith.constant 143 : index
    %143 = memref.load %arg2[%c143] : memref<151xf32, #tpu.memory_space<smem>>
    %c144 = arith.constant 144 : index
    %144 = memref.load %arg2[%c144] : memref<151xf32, #tpu.memory_space<smem>>
    %c145 = arith.constant 145 : index
    %145 = memref.load %arg2[%c145] : memref<151xf32, #tpu.memory_space<smem>>
    %c146 = arith.constant 146 : index
    %146 = memref.load %arg2[%c146] : memref<151xf32, #tpu.memory_space<smem>>
    %c147 = arith.constant 147 : index
    %147 = memref.load %arg2[%c147] : memref<151xf32, #tpu.memory_space<smem>>
    %c148 = arith.constant 148 : index
    %148 = memref.load %arg2[%c148] : memref<151xf32, #tpu.memory_space<smem>>
    %c149 = arith.constant 149 : index
    %149 = memref.load %arg2[%c149] : memref<151xf32, #tpu.memory_space<smem>>
    %c150 = arith.constant 150 : index
    %150 = memref.load %arg2[%c150] : memref<151xf32, #tpu.memory_space<smem>>
    %c0_0 = arith.constant 0 : index
    %c0_1 = arith.constant 0 : index
    %c0_2 = arith.constant 0 : index
    %151 = vector.load %arg1[%c0_0, %c0_1, %c0_2] : memref<2x8x128xf32, #tpu.memory_space<vmem>>, vector<1x8x128xf32>
    %152 = vector.shape_cast %151 : vector<1x8x128xf32> to vector<8x128xf32>
    %c1_3 = arith.constant 1 : index
    %c0_4 = arith.constant 0 : index
    %c0_5 = arith.constant 0 : index
    %153 = vector.load %arg1[%c1_3, %c0_4, %c0_5] : memref<2x8x128xf32, #tpu.memory_space<vmem>>, vector<1x8x128xf32>
    %154 = vector.shape_cast %153 : vector<1x8x128xf32> to vector<8x128xf32>
    %155 = vector.broadcast %0 : f32 to vector<8x128xf32>
    %156 = arith.mulf %155, %152 : vector<8x128xf32>
    %157 = vector.broadcast %20 : f32 to vector<8x128xf32>
    %158 = arith.addf %157, %156 : vector<8x128xf32>
    %159 = vector.broadcast %1 : f32 to vector<8x128xf32>
    %160 = arith.mulf %159, %154 : vector<8x128xf32>
    %161 = arith.addf %158, %160 : vector<8x128xf32>
    %cst = arith.constant 0.000000e+00 : f32
    %162 = vector.broadcast %cst : f32 to vector<8x128xf32>
    %163 = arith.maximumf %161, %162 : vector<8x128xf32>
    %164 = vector.broadcast %2 : f32 to vector<8x128xf32>
    %165 = arith.mulf %164, %152 : vector<8x128xf32>
    %166 = vector.broadcast %21 : f32 to vector<8x128xf32>
    %167 = arith.addf %166, %165 : vector<8x128xf32>
    %168 = vector.broadcast %3 : f32 to vector<8x128xf32>
    %169 = arith.mulf %168, %154 : vector<8x128xf32>
    %170 = arith.addf %167, %169 : vector<8x128xf32>
    %cst_6 = arith.constant 0.000000e+00 : f32
    %171 = vector.broadcast %cst_6 : f32 to vector<8x128xf32>
    %172 = arith.maximumf %170, %171 : vector<8x128xf32>
    %173 = vector.broadcast %4 : f32 to vector<8x128xf32>
    %174 = arith.mulf %173, %152 : vector<8x128xf32>
    %175 = vector.broadcast %22 : f32 to vector<8x128xf32>
    %176 = arith.addf %175, %174 : vector<8x128xf32>
    %177 = vector.broadcast %5 : f32 to vector<8x128xf32>
    %178 = arith.mulf %177, %154 : vector<8x128xf32>
    %179 = arith.addf %176, %178 : vector<8x128xf32>
    %cst_7 = arith.constant 0.000000e+00 : f32
    %180 = vector.broadcast %cst_7 : f32 to vector<8x128xf32>
    %181 = arith.maximumf %179, %180 : vector<8x128xf32>
    %182 = vector.broadcast %6 : f32 to vector<8x128xf32>
    %183 = arith.mulf %182, %152 : vector<8x128xf32>
    %184 = vector.broadcast %23 : f32 to vector<8x128xf32>
    %185 = arith.addf %184, %183 : vector<8x128xf32>
    %186 = vector.broadcast %7 : f32 to vector<8x128xf32>
    %187 = arith.mulf %186, %154 : vector<8x128xf32>
    %188 = arith.addf %185, %187 : vector<8x128xf32>
    %cst_8 = arith.constant 0.000000e+00 : f32
    %189 = vector.broadcast %cst_8 : f32 to vector<8x128xf32>
    %190 = arith.maximumf %188, %189 : vector<8x128xf32>
    %191 = vector.broadcast %8 : f32 to vector<8x128xf32>
    %192 = arith.mulf %191, %152 : vector<8x128xf32>
    %193 = vector.broadcast %24 : f32 to vector<8x128xf32>
    %194 = arith.addf %193, %192 : vector<8x128xf32>
    %195 = vector.broadcast %9 : f32 to vector<8x128xf32>
    %196 = arith.mulf %195, %154 : vector<8x128xf32>
    %197 = arith.addf %194, %196 : vector<8x128xf32>
    %cst_9 = arith.constant 0.000000e+00 : f32
    %198 = vector.broadcast %cst_9 : f32 to vector<8x128xf32>
    %199 = arith.maximumf %197, %198 : vector<8x128xf32>
    %200 = vector.broadcast %10 : f32 to vector<8x128xf32>
    %201 = arith.mulf %200, %152 : vector<8x128xf32>
    %202 = vector.broadcast %25 : f32 to vector<8x128xf32>
    %203 = arith.addf %202, %201 : vector<8x128xf32>
    %204 = vector.broadcast %11 : f32 to vector<8x128xf32>
    %205 = arith.mulf %204, %154 : vector<8x128xf32>
    %206 = arith.addf %203, %205 : vector<8x128xf32>
    %cst_10 = arith.constant 0.000000e+00 : f32
    %207 = vector.broadcast %cst_10 : f32 to vector<8x128xf32>
    %208 = arith.maximumf %206, %207 : vector<8x128xf32>
    %209 = vector.broadcast %12 : f32 to vector<8x128xf32>
    %210 = arith.mulf %209, %152 : vector<8x128xf32>
    %211 = vector.broadcast %26 : f32 to vector<8x128xf32>
    %212 = arith.addf %211, %210 : vector<8x128xf32>
    %213 = vector.broadcast %13 : f32 to vector<8x128xf32>
    %214 = arith.mulf %213, %154 : vector<8x128xf32>
    %215 = arith.addf %212, %214 : vector<8x128xf32>
    %cst_11 = arith.constant 0.000000e+00 : f32
    %216 = vector.broadcast %cst_11 : f32 to vector<8x128xf32>
    %217 = arith.maximumf %215, %216 : vector<8x128xf32>
    %218 = vector.broadcast %14 : f32 to vector<8x128xf32>
    %219 = arith.mulf %218, %152 : vector<8x128xf32>
    %220 = vector.broadcast %27 : f32 to vector<8x128xf32>
    %221 = arith.addf %220, %219 : vector<8x128xf32>
    %222 = vector.broadcast %15 : f32 to vector<8x128xf32>
    %223 = arith.mulf %222, %154 : vector<8x128xf32>
    %224 = arith.addf %221, %223 : vector<8x128xf32>
    %cst_12 = arith.constant 0.000000e+00 : f32
    %225 = vector.broadcast %cst_12 : f32 to vector<8x128xf32>
    %226 = arith.maximumf %224, %225 : vector<8x128xf32>
    %227 = vector.broadcast %16 : f32 to vector<8x128xf32>
    %228 = arith.mulf %227, %152 : vector<8x128xf32>
    %229 = vector.broadcast %28 : f32 to vector<8x128xf32>
    %230 = arith.addf %229, %228 : vector<8x128xf32>
    %231 = vector.broadcast %17 : f32 to vector<8x128xf32>
    %232 = arith.mulf %231, %154 : vector<8x128xf32>
    %233 = arith.addf %230, %232 : vector<8x128xf32>
    %cst_13 = arith.constant 0.000000e+00 : f32
    %234 = vector.broadcast %cst_13 : f32 to vector<8x128xf32>
    %235 = arith.maximumf %233, %234 : vector<8x128xf32>
    %236 = vector.broadcast %18 : f32 to vector<8x128xf32>
    %237 = arith.mulf %236, %152 : vector<8x128xf32>
    %238 = vector.broadcast %29 : f32 to vector<8x128xf32>
    %239 = arith.addf %238, %237 : vector<8x128xf32>
    %240 = vector.broadcast %19 : f32 to vector<8x128xf32>
    %241 = arith.mulf %240, %154 : vector<8x128xf32>
    %242 = arith.addf %239, %241 : vector<8x128xf32>
    %cst_14 = arith.constant 0.000000e+00 : f32
    %243 = vector.broadcast %cst_14 : f32 to vector<8x128xf32>
    %244 = arith.maximumf %242, %243 : vector<8x128xf32>
    %245 = vector.broadcast %30 : f32 to vector<8x128xf32>
    %246 = arith.mulf %245, %163 : vector<8x128xf32>
    %247 = vector.broadcast %130 : f32 to vector<8x128xf32>
    %248 = arith.addf %247, %246 : vector<8x128xf32>
    %249 = vector.broadcast %31 : f32 to vector<8x128xf32>
    %250 = arith.mulf %249, %172 : vector<8x128xf32>
    %251 = arith.addf %248, %250 : vector<8x128xf32>
    %252 = vector.broadcast %32 : f32 to vector<8x128xf32>
    %253 = arith.mulf %252, %181 : vector<8x128xf32>
    %254 = arith.addf %251, %253 : vector<8x128xf32>
    %255 = vector.broadcast %33 : f32 to vector<8x128xf32>
    %256 = arith.mulf %255, %190 : vector<8x128xf32>
    %257 = arith.addf %254, %256 : vector<8x128xf32>
    %258 = vector.broadcast %34 : f32 to vector<8x128xf32>
    %259 = arith.mulf %258, %199 : vector<8x128xf32>
    %260 = arith.addf %257, %259 : vector<8x128xf32>
    %261 = vector.broadcast %35 : f32 to vector<8x128xf32>
    %262 = arith.mulf %261, %208 : vector<8x128xf32>
    %263 = arith.addf %260, %262 : vector<8x128xf32>
    %264 = vector.broadcast %36 : f32 to vector<8x128xf32>
    %265 = arith.mulf %264, %217 : vector<8x128xf32>
    %266 = arith.addf %263, %265 : vector<8x128xf32>
    %267 = vector.broadcast %37 : f32 to vector<8x128xf32>
    %268 = arith.mulf %267, %226 : vector<8x128xf32>
    %269 = arith.addf %266, %268 : vector<8x128xf32>
    %270 = vector.broadcast %38 : f32 to vector<8x128xf32>
    %271 = arith.mulf %270, %235 : vector<8x128xf32>
    %272 = arith.addf %269, %271 : vector<8x128xf32>
    %273 = vector.broadcast %39 : f32 to vector<8x128xf32>
    %274 = arith.mulf %273, %244 : vector<8x128xf32>
    %275 = arith.addf %272, %274 : vector<8x128xf32>
    %cst_15 = arith.constant 0.000000e+00 : f32
    %276 = vector.broadcast %cst_15 : f32 to vector<8x128xf32>
    %277 = arith.maximumf %275, %276 : vector<8x128xf32>
    %278 = vector.broadcast %40 : f32 to vector<8x128xf32>
    %279 = arith.mulf %278, %163 : vector<8x128xf32>
    %280 = vector.broadcast %131 : f32 to vector<8x128xf32>
    %281 = arith.addf %280, %279 : vector<8x128xf32>
    %282 = vector.broadcast %41 : f32 to vector<8x128xf32>
    %283 = arith.mulf %282, %172 : vector<8x128xf32>
    %284 = arith.addf %281, %283 : vector<8x128xf32>
    %285 = vector.broadcast %42 : f32 to vector<8x128xf32>
    %286 = arith.mulf %285, %181 : vector<8x128xf32>
    %287 = arith.addf %284, %286 : vector<8x128xf32>
    %288 = vector.broadcast %43 : f32 to vector<8x128xf32>
    %289 = arith.mulf %288, %190 : vector<8x128xf32>
    %290 = arith.addf %287, %289 : vector<8x128xf32>
    %291 = vector.broadcast %44 : f32 to vector<8x128xf32>
    %292 = arith.mulf %291, %199 : vector<8x128xf32>
    %293 = arith.addf %290, %292 : vector<8x128xf32>
    %294 = vector.broadcast %45 : f32 to vector<8x128xf32>
    %295 = arith.mulf %294, %208 : vector<8x128xf32>
    %296 = arith.addf %293, %295 : vector<8x128xf32>
    %297 = vector.broadcast %46 : f32 to vector<8x128xf32>
    %298 = arith.mulf %297, %217 : vector<8x128xf32>
    %299 = arith.addf %296, %298 : vector<8x128xf32>
    %300 = vector.broadcast %47 : f32 to vector<8x128xf32>
    %301 = arith.mulf %300, %226 : vector<8x128xf32>
    %302 = arith.addf %299, %301 : vector<8x128xf32>
    %303 = vector.broadcast %48 : f32 to vector<8x128xf32>
    %304 = arith.mulf %303, %235 : vector<8x128xf32>
    %305 = arith.addf %302, %304 : vector<8x128xf32>
    %306 = vector.broadcast %49 : f32 to vector<8x128xf32>
    %307 = arith.mulf %306, %244 : vector<8x128xf32>
    %308 = arith.addf %305, %307 : vector<8x128xf32>
    %cst_16 = arith.constant 0.000000e+00 : f32
    %309 = vector.broadcast %cst_16 : f32 to vector<8x128xf32>
    %310 = arith.maximumf %308, %309 : vector<8x128xf32>
    %311 = vector.broadcast %50 : f32 to vector<8x128xf32>
    %312 = arith.mulf %311, %163 : vector<8x128xf32>
    %313 = vector.broadcast %132 : f32 to vector<8x128xf32>
    %314 = arith.addf %313, %312 : vector<8x128xf32>
    %315 = vector.broadcast %51 : f32 to vector<8x128xf32>
    %316 = arith.mulf %315, %172 : vector<8x128xf32>
    %317 = arith.addf %314, %316 : vector<8x128xf32>
    %318 = vector.broadcast %52 : f32 to vector<8x128xf32>
    %319 = arith.mulf %318, %181 : vector<8x128xf32>
    %320 = arith.addf %317, %319 : vector<8x128xf32>
    %321 = vector.broadcast %53 : f32 to vector<8x128xf32>
    %322 = arith.mulf %321, %190 : vector<8x128xf32>
    %323 = arith.addf %320, %322 : vector<8x128xf32>
    %324 = vector.broadcast %54 : f32 to vector<8x128xf32>
    %325 = arith.mulf %324, %199 : vector<8x128xf32>
    %326 = arith.addf %323, %325 : vector<8x128xf32>
    %327 = vector.broadcast %55 : f32 to vector<8x128xf32>
    %328 = arith.mulf %327, %208 : vector<8x128xf32>
    %329 = arith.addf %326, %328 : vector<8x128xf32>
    %330 = vector.broadcast %56 : f32 to vector<8x128xf32>
    %331 = arith.mulf %330, %217 : vector<8x128xf32>
    %332 = arith.addf %329, %331 : vector<8x128xf32>
    %333 = vector.broadcast %57 : f32 to vector<8x128xf32>
    %334 = arith.mulf %333, %226 : vector<8x128xf32>
    %335 = arith.addf %332, %334 : vector<8x128xf32>
    %336 = vector.broadcast %58 : f32 to vector<8x128xf32>
    %337 = arith.mulf %336, %235 : vector<8x128xf32>
    %338 = arith.addf %335, %337 : vector<8x128xf32>
    %339 = vector.broadcast %59 : f32 to vector<8x128xf32>
    %340 = arith.mulf %339, %244 : vector<8x128xf32>
    %341 = arith.addf %338, %340 : vector<8x128xf32>
    %cst_17 = arith.constant 0.000000e+00 : f32
    %342 = vector.broadcast %cst_17 : f32 to vector<8x128xf32>
    %343 = arith.maximumf %341, %342 : vector<8x128xf32>
    %344 = vector.broadcast %60 : f32 to vector<8x128xf32>
    %345 = arith.mulf %344, %163 : vector<8x128xf32>
    %346 = vector.broadcast %133 : f32 to vector<8x128xf32>
    %347 = arith.addf %346, %345 : vector<8x128xf32>
    %348 = vector.broadcast %61 : f32 to vector<8x128xf32>
    %349 = arith.mulf %348, %172 : vector<8x128xf32>
    %350 = arith.addf %347, %349 : vector<8x128xf32>
    %351 = vector.broadcast %62 : f32 to vector<8x128xf32>
    %352 = arith.mulf %351, %181 : vector<8x128xf32>
    %353 = arith.addf %350, %352 : vector<8x128xf32>
    %354 = vector.broadcast %63 : f32 to vector<8x128xf32>
    %355 = arith.mulf %354, %190 : vector<8x128xf32>
    %356 = arith.addf %353, %355 : vector<8x128xf32>
    %357 = vector.broadcast %64 : f32 to vector<8x128xf32>
    %358 = arith.mulf %357, %199 : vector<8x128xf32>
    %359 = arith.addf %356, %358 : vector<8x128xf32>
    %360 = vector.broadcast %65 : f32 to vector<8x128xf32>
    %361 = arith.mulf %360, %208 : vector<8x128xf32>
    %362 = arith.addf %359, %361 : vector<8x128xf32>
    %363 = vector.broadcast %66 : f32 to vector<8x128xf32>
    %364 = arith.mulf %363, %217 : vector<8x128xf32>
    %365 = arith.addf %362, %364 : vector<8x128xf32>
    %366 = vector.broadcast %67 : f32 to vector<8x128xf32>
    %367 = arith.mulf %366, %226 : vector<8x128xf32>
    %368 = arith.addf %365, %367 : vector<8x128xf32>
    %369 = vector.broadcast %68 : f32 to vector<8x128xf32>
    %370 = arith.mulf %369, %235 : vector<8x128xf32>
    %371 = arith.addf %368, %370 : vector<8x128xf32>
    %372 = vector.broadcast %69 : f32 to vector<8x128xf32>
    %373 = arith.mulf %372, %244 : vector<8x128xf32>
    %374 = arith.addf %371, %373 : vector<8x128xf32>
    %cst_18 = arith.constant 0.000000e+00 : f32
    %375 = vector.broadcast %cst_18 : f32 to vector<8x128xf32>
    %376 = arith.maximumf %374, %375 : vector<8x128xf32>
    %377 = vector.broadcast %70 : f32 to vector<8x128xf32>
    %378 = arith.mulf %377, %163 : vector<8x128xf32>
    %379 = vector.broadcast %134 : f32 to vector<8x128xf32>
    %380 = arith.addf %379, %378 : vector<8x128xf32>
    %381 = vector.broadcast %71 : f32 to vector<8x128xf32>
    %382 = arith.mulf %381, %172 : vector<8x128xf32>
    %383 = arith.addf %380, %382 : vector<8x128xf32>
    %384 = vector.broadcast %72 : f32 to vector<8x128xf32>
    %385 = arith.mulf %384, %181 : vector<8x128xf32>
    %386 = arith.addf %383, %385 : vector<8x128xf32>
    %387 = vector.broadcast %73 : f32 to vector<8x128xf32>
    %388 = arith.mulf %387, %190 : vector<8x128xf32>
    %389 = arith.addf %386, %388 : vector<8x128xf32>
    %390 = vector.broadcast %74 : f32 to vector<8x128xf32>
    %391 = arith.mulf %390, %199 : vector<8x128xf32>
    %392 = arith.addf %389, %391 : vector<8x128xf32>
    %393 = vector.broadcast %75 : f32 to vector<8x128xf32>
    %394 = arith.mulf %393, %208 : vector<8x128xf32>
    %395 = arith.addf %392, %394 : vector<8x128xf32>
    %396 = vector.broadcast %76 : f32 to vector<8x128xf32>
    %397 = arith.mulf %396, %217 : vector<8x128xf32>
    %398 = arith.addf %395, %397 : vector<8x128xf32>
    %399 = vector.broadcast %77 : f32 to vector<8x128xf32>
    %400 = arith.mulf %399, %226 : vector<8x128xf32>
    %401 = arith.addf %398, %400 : vector<8x128xf32>
    %402 = vector.broadcast %78 : f32 to vector<8x128xf32>
    %403 = arith.mulf %402, %235 : vector<8x128xf32>
    %404 = arith.addf %401, %403 : vector<8x128xf32>
    %405 = vector.broadcast %79 : f32 to vector<8x128xf32>
    %406 = arith.mulf %405, %244 : vector<8x128xf32>
    %407 = arith.addf %404, %406 : vector<8x128xf32>
    %cst_19 = arith.constant 0.000000e+00 : f32
    %408 = vector.broadcast %cst_19 : f32 to vector<8x128xf32>
    %409 = arith.maximumf %407, %408 : vector<8x128xf32>
    %410 = vector.broadcast %80 : f32 to vector<8x128xf32>
    %411 = arith.mulf %410, %163 : vector<8x128xf32>
    %412 = vector.broadcast %135 : f32 to vector<8x128xf32>
    %413 = arith.addf %412, %411 : vector<8x128xf32>
    %414 = vector.broadcast %81 : f32 to vector<8x128xf32>
    %415 = arith.mulf %414, %172 : vector<8x128xf32>
    %416 = arith.addf %413, %415 : vector<8x128xf32>
    %417 = vector.broadcast %82 : f32 to vector<8x128xf32>
    %418 = arith.mulf %417, %181 : vector<8x128xf32>
    %419 = arith.addf %416, %418 : vector<8x128xf32>
    %420 = vector.broadcast %83 : f32 to vector<8x128xf32>
    %421 = arith.mulf %420, %190 : vector<8x128xf32>
    %422 = arith.addf %419, %421 : vector<8x128xf32>
    %423 = vector.broadcast %84 : f32 to vector<8x128xf32>
    %424 = arith.mulf %423, %199 : vector<8x128xf32>
    %425 = arith.addf %422, %424 : vector<8x128xf32>
    %426 = vector.broadcast %85 : f32 to vector<8x128xf32>
    %427 = arith.mulf %426, %208 : vector<8x128xf32>
    %428 = arith.addf %425, %427 : vector<8x128xf32>
    %429 = vector.broadcast %86 : f32 to vector<8x128xf32>
    %430 = arith.mulf %429, %217 : vector<8x128xf32>
    %431 = arith.addf %428, %430 : vector<8x128xf32>
    %432 = vector.broadcast %87 : f32 to vector<8x128xf32>
    %433 = arith.mulf %432, %226 : vector<8x128xf32>
    %434 = arith.addf %431, %433 : vector<8x128xf32>
    %435 = vector.broadcast %88 : f32 to vector<8x128xf32>
    %436 = arith.mulf %435, %235 : vector<8x128xf32>
    %437 = arith.addf %434, %436 : vector<8x128xf32>
    %438 = vector.broadcast %89 : f32 to vector<8x128xf32>
    %439 = arith.mulf %438, %244 : vector<8x128xf32>
    %440 = arith.addf %437, %439 : vector<8x128xf32>
    %cst_20 = arith.constant 0.000000e+00 : f32
    %441 = vector.broadcast %cst_20 : f32 to vector<8x128xf32>
    %442 = arith.maximumf %440, %441 : vector<8x128xf32>
    %443 = vector.broadcast %90 : f32 to vector<8x128xf32>
    %444 = arith.mulf %443, %163 : vector<8x128xf32>
    %445 = vector.broadcast %136 : f32 to vector<8x128xf32>
    %446 = arith.addf %445, %444 : vector<8x128xf32>
    %447 = vector.broadcast %91 : f32 to vector<8x128xf32>
    %448 = arith.mulf %447, %172 : vector<8x128xf32>
    %449 = arith.addf %446, %448 : vector<8x128xf32>
    %450 = vector.broadcast %92 : f32 to vector<8x128xf32>
    %451 = arith.mulf %450, %181 : vector<8x128xf32>
    %452 = arith.addf %449, %451 : vector<8x128xf32>
    %453 = vector.broadcast %93 : f32 to vector<8x128xf32>
    %454 = arith.mulf %453, %190 : vector<8x128xf32>
    %455 = arith.addf %452, %454 : vector<8x128xf32>
    %456 = vector.broadcast %94 : f32 to vector<8x128xf32>
    %457 = arith.mulf %456, %199 : vector<8x128xf32>
    %458 = arith.addf %455, %457 : vector<8x128xf32>
    %459 = vector.broadcast %95 : f32 to vector<8x128xf32>
    %460 = arith.mulf %459, %208 : vector<8x128xf32>
    %461 = arith.addf %458, %460 : vector<8x128xf32>
    %462 = vector.broadcast %96 : f32 to vector<8x128xf32>
    %463 = arith.mulf %462, %217 : vector<8x128xf32>
    %464 = arith.addf %461, %463 : vector<8x128xf32>
    %465 = vector.broadcast %97 : f32 to vector<8x128xf32>
    %466 = arith.mulf %465, %226 : vector<8x128xf32>
    %467 = arith.addf %464, %466 : vector<8x128xf32>
    %468 = vector.broadcast %98 : f32 to vector<8x128xf32>
    %469 = arith.mulf %468, %235 : vector<8x128xf32>
    %470 = arith.addf %467, %469 : vector<8x128xf32>
    %471 = vector.broadcast %99 : f32 to vector<8x128xf32>
    %472 = arith.mulf %471, %244 : vector<8x128xf32>
    %473 = arith.addf %470, %472 : vector<8x128xf32>
    %cst_21 = arith.constant 0.000000e+00 : f32
    %474 = vector.broadcast %cst_21 : f32 to vector<8x128xf32>
    %475 = arith.maximumf %473, %474 : vector<8x128xf32>
    %476 = vector.broadcast %100 : f32 to vector<8x128xf32>
    %477 = arith.mulf %476, %163 : vector<8x128xf32>
    %478 = vector.broadcast %137 : f32 to vector<8x128xf32>
    %479 = arith.addf %478, %477 : vector<8x128xf32>
    %480 = vector.broadcast %101 : f32 to vector<8x128xf32>
    %481 = arith.mulf %480, %172 : vector<8x128xf32>
    %482 = arith.addf %479, %481 : vector<8x128xf32>
    %483 = vector.broadcast %102 : f32 to vector<8x128xf32>
    %484 = arith.mulf %483, %181 : vector<8x128xf32>
    %485 = arith.addf %482, %484 : vector<8x128xf32>
    %486 = vector.broadcast %103 : f32 to vector<8x128xf32>
    %487 = arith.mulf %486, %190 : vector<8x128xf32>
    %488 = arith.addf %485, %487 : vector<8x128xf32>
    %489 = vector.broadcast %104 : f32 to vector<8x128xf32>
    %490 = arith.mulf %489, %199 : vector<8x128xf32>
    %491 = arith.addf %488, %490 : vector<8x128xf32>
    %492 = vector.broadcast %105 : f32 to vector<8x128xf32>
    %493 = arith.mulf %492, %208 : vector<8x128xf32>
    %494 = arith.addf %491, %493 : vector<8x128xf32>
    %495 = vector.broadcast %106 : f32 to vector<8x128xf32>
    %496 = arith.mulf %495, %217 : vector<8x128xf32>
    %497 = arith.addf %494, %496 : vector<8x128xf32>
    %498 = vector.broadcast %107 : f32 to vector<8x128xf32>
    %499 = arith.mulf %498, %226 : vector<8x128xf32>
    %500 = arith.addf %497, %499 : vector<8x128xf32>
    %501 = vector.broadcast %108 : f32 to vector<8x128xf32>
    %502 = arith.mulf %501, %235 : vector<8x128xf32>
    %503 = arith.addf %500, %502 : vector<8x128xf32>
    %504 = vector.broadcast %109 : f32 to vector<8x128xf32>
    %505 = arith.mulf %504, %244 : vector<8x128xf32>
    %506 = arith.addf %503, %505 : vector<8x128xf32>
    %cst_22 = arith.constant 0.000000e+00 : f32
    %507 = vector.broadcast %cst_22 : f32 to vector<8x128xf32>
    %508 = arith.maximumf %506, %507 : vector<8x128xf32>
    %509 = vector.broadcast %110 : f32 to vector<8x128xf32>
    %510 = arith.mulf %509, %163 : vector<8x128xf32>
    %511 = vector.broadcast %138 : f32 to vector<8x128xf32>
    %512 = arith.addf %511, %510 : vector<8x128xf32>
    %513 = vector.broadcast %111 : f32 to vector<8x128xf32>
    %514 = arith.mulf %513, %172 : vector<8x128xf32>
    %515 = arith.addf %512, %514 : vector<8x128xf32>
    %516 = vector.broadcast %112 : f32 to vector<8x128xf32>
    %517 = arith.mulf %516, %181 : vector<8x128xf32>
    %518 = arith.addf %515, %517 : vector<8x128xf32>
    %519 = vector.broadcast %113 : f32 to vector<8x128xf32>
    %520 = arith.mulf %519, %190 : vector<8x128xf32>
    %521 = arith.addf %518, %520 : vector<8x128xf32>
    %522 = vector.broadcast %114 : f32 to vector<8x128xf32>
    %523 = arith.mulf %522, %199 : vector<8x128xf32>
    %524 = arith.addf %521, %523 : vector<8x128xf32>
    %525 = vector.broadcast %115 : f32 to vector<8x128xf32>
    %526 = arith.mulf %525, %208 : vector<8x128xf32>
    %527 = arith.addf %524, %526 : vector<8x128xf32>
    %528 = vector.broadcast %116 : f32 to vector<8x128xf32>
    %529 = arith.mulf %528, %217 : vector<8x128xf32>
    %530 = arith.addf %527, %529 : vector<8x128xf32>
    %531 = vector.broadcast %117 : f32 to vector<8x128xf32>
    %532 = arith.mulf %531, %226 : vector<8x128xf32>
    %533 = arith.addf %530, %532 : vector<8x128xf32>
    %534 = vector.broadcast %118 : f32 to vector<8x128xf32>
    %535 = arith.mulf %534, %235 : vector<8x128xf32>
    %536 = arith.addf %533, %535 : vector<8x128xf32>
    %537 = vector.broadcast %119 : f32 to vector<8x128xf32>
    %538 = arith.mulf %537, %244 : vector<8x128xf32>
    %539 = arith.addf %536, %538 : vector<8x128xf32>
    %cst_23 = arith.constant 0.000000e+00 : f32
    %540 = vector.broadcast %cst_23 : f32 to vector<8x128xf32>
    %541 = arith.maximumf %539, %540 : vector<8x128xf32>
    %542 = vector.broadcast %120 : f32 to vector<8x128xf32>
    %543 = arith.mulf %542, %163 : vector<8x128xf32>
    %544 = vector.broadcast %139 : f32 to vector<8x128xf32>
    %545 = arith.addf %544, %543 : vector<8x128xf32>
    %546 = vector.broadcast %121 : f32 to vector<8x128xf32>
    %547 = arith.mulf %546, %172 : vector<8x128xf32>
    %548 = arith.addf %545, %547 : vector<8x128xf32>
    %549 = vector.broadcast %122 : f32 to vector<8x128xf32>
    %550 = arith.mulf %549, %181 : vector<8x128xf32>
    %551 = arith.addf %548, %550 : vector<8x128xf32>
    %552 = vector.broadcast %123 : f32 to vector<8x128xf32>
    %553 = arith.mulf %552, %190 : vector<8x128xf32>
    %554 = arith.addf %551, %553 : vector<8x128xf32>
    %555 = vector.broadcast %124 : f32 to vector<8x128xf32>
    %556 = arith.mulf %555, %199 : vector<8x128xf32>
    %557 = arith.addf %554, %556 : vector<8x128xf32>
    %558 = vector.broadcast %125 : f32 to vector<8x128xf32>
    %559 = arith.mulf %558, %208 : vector<8x128xf32>
    %560 = arith.addf %557, %559 : vector<8x128xf32>
    %561 = vector.broadcast %126 : f32 to vector<8x128xf32>
    %562 = arith.mulf %561, %217 : vector<8x128xf32>
    %563 = arith.addf %560, %562 : vector<8x128xf32>
    %564 = vector.broadcast %127 : f32 to vector<8x128xf32>
    %565 = arith.mulf %564, %226 : vector<8x128xf32>
    %566 = arith.addf %563, %565 : vector<8x128xf32>
    %567 = vector.broadcast %128 : f32 to vector<8x128xf32>
    %568 = arith.mulf %567, %235 : vector<8x128xf32>
    %569 = arith.addf %566, %568 : vector<8x128xf32>
    %570 = vector.broadcast %129 : f32 to vector<8x128xf32>
    %571 = arith.mulf %570, %244 : vector<8x128xf32>
    %572 = arith.addf %569, %571 : vector<8x128xf32>
    %cst_24 = arith.constant 0.000000e+00 : f32
    %573 = vector.broadcast %cst_24 : f32 to vector<8x128xf32>
    %574 = arith.maximumf %572, %573 : vector<8x128xf32>
    %575 = vector.broadcast %140 : f32 to vector<8x128xf32>
    %576 = arith.mulf %575, %277 : vector<8x128xf32>
    %577 = vector.broadcast %150 : f32 to vector<8x128xf32>
    %578 = arith.addf %577, %576 : vector<8x128xf32>
    %579 = vector.broadcast %141 : f32 to vector<8x128xf32>
    %580 = arith.mulf %579, %310 : vector<8x128xf32>
    %581 = arith.addf %578, %580 : vector<8x128xf32>
    %582 = vector.broadcast %142 : f32 to vector<8x128xf32>
    %583 = arith.mulf %582, %343 : vector<8x128xf32>
    %584 = arith.addf %581, %583 : vector<8x128xf32>
    %585 = vector.broadcast %143 : f32 to vector<8x128xf32>
    %586 = arith.mulf %585, %376 : vector<8x128xf32>
    %587 = arith.addf %584, %586 : vector<8x128xf32>
    %588 = vector.broadcast %144 : f32 to vector<8x128xf32>
    %589 = arith.mulf %588, %409 : vector<8x128xf32>
    %590 = arith.addf %587, %589 : vector<8x128xf32>
    %591 = vector.broadcast %145 : f32 to vector<8x128xf32>
    %592 = arith.mulf %591, %442 : vector<8x128xf32>
    %593 = arith.addf %590, %592 : vector<8x128xf32>
    %594 = vector.broadcast %146 : f32 to vector<8x128xf32>
    %595 = arith.mulf %594, %475 : vector<8x128xf32>
    %596 = arith.addf %593, %595 : vector<8x128xf32>
    %597 = vector.broadcast %147 : f32 to vector<8x128xf32>
    %598 = arith.mulf %597, %508 : vector<8x128xf32>
    %599 = arith.addf %596, %598 : vector<8x128xf32>
    %600 = vector.broadcast %148 : f32 to vector<8x128xf32>
    %601 = arith.mulf %600, %541 : vector<8x128xf32>
    %602 = arith.addf %599, %601 : vector<8x128xf32>
    %603 = vector.broadcast %149 : f32 to vector<8x128xf32>
    %604 = arith.mulf %603, %574 : vector<8x128xf32>
    %605 = arith.addf %602, %604 : vector<8x128xf32>
    %c0_25 = arith.constant 0 : index
    %c0_26 = arith.constant 0 : index
    %606 = vector.load %arg3[%c0_25, %c0_26] : memref<8x128xf32, #tpu.memory_space<vmem>>, vector<8x128xf32>
    tpu.vector_store %arg3[%c0_25, %c0_26], %605 {strides = array<i32>} : memref<8x128xf32, #tpu.memory_space<vmem>>, vector<8x128xf32>,
    return
  }
  func.func @transform_0(%arg0: i32) -> (i32, i32, i32) {
    %c0_i32 = arith.constant 0 : i32
    %c0_i32_0 = arith.constant 0 : i32
    %c0_i32_1 = arith.constant 0 : i32
    return %c0_i32, %arg0, %c0_i32_0 : i32, i32, i32
  }
  func.func @transform_1(%arg0: i32) -> i32 {
    %c0_i32 = arith.constant 0 : i32
    %c0_i32_0 = arith.constant 0 : i32
    return %c0_i32 : i32
  }
  func.func @transform_2(%arg0: i32) -> (i32, i32) {
    %c0_i32 = arith.constant 0 : i32
    %c0_i32_0 = arith.constant 0 : i32
    return %arg0, %c0_i32 : i32, i32
  }
}

</mosaic_0001>

<bundles_post_ra>
// kernel: tpu_custom_call.1
= control target key start
LH: loop header
LB: loop body
LE: loop exit
PB: predicated region body
PF: predicated region fallthrough
CT: control target
= control target key end

     0   :  { %s1751_s0 = inlined_call_operand.hbm [shape: f32[2,8,128], index: 0, kind: input, shape index: {}]   ;;  %s1752_s1 = inlined_call_operand.hbm [shape: f32[151], index: 1, kind: input, shape index: {}]   ;;  %s1753_s2 = inlined_call_operand.hbm [shape: f32[8,128], index: 2, kind: output, shape index: {}]  }
   0x1   :  { %1757 = sst [smem:[#allocation95_spill]] %s1753_s2 }
   0x2   :  { %7 = vsyncpa [#allocation3], 0 }
   0x3   :  { %8 = vsyncpa [#allocation5], 0 }
   0x4   :  { %9 = vsyncpa [#allocation4], 0  ;;  %s848_s9 = smov [#allocation2]  }
   0x5   :  { %s15_s10 = sshll.u32 %s848_s9, 4  ;;  %s16_s10 = int_to_ptr.vmem [resolvable:$true] %s15_s10 }
   0x6   :  { %s802_s11 = scalar_lea.vmem %s16_s10, 256  ;;  %p807_p1 = scmp.lt.s32.totalorder %s16_s10, %s16_s10 }
   0x7   :  { %p803_p0 = scmp.ne.s32.totalorder %s16_s10, %s802_s11  ;;  %p808_p2 = scmp.lt.s32.totalorder %s802_s11, %s802_s11 }
   0x9   :  { %p809_p3 = por %p808_p2, %p807_p1 }
   0xb   :  { %p810_p4 = pnand %p809_p3, %p803_p0 }
   0xd   :  { %813 = shalt.err (!%p810_p4)
}
   0xe   :  { %s849_s12 = smov 128   ;;  %s850_s13 = smov 8  }
   0xf   :  { %21 = dma.hbm_to_vmem [thread:$0]  %s1751_s0, 256, %s16_s10, [#allocation3], %s849_s12, %s849_s12, %s850_s13  }
  0x10   :  { %s851_s16 = smov [#allocation6]  }
  0x11   :  { %29 = dma.hbm_to_smem %s1752_s1, 32, %s851_s16, [#allocation5]  }
  0x12   :  { %842 = dma.done.wait [#allocation3], 256  }
  0x13   :  { %843 = vsyncadd [#allocation3], 4294967040 }
  0x14   :  { %844 = dma.done.wait [#allocation5], 32  }
  0x15   :  { %845 = vsyncadd [#allocation5], 4294967264 }
  0x16   :  { %36 = sfence }
  0x17   :  { %s874_s19 = sld [smem:[#allocation6]]  ;;  %v1000_v0 = vld [vmem:[#allocation2] sm:$0xff]  ;;  %v1005_v2 = vld [vmem:[#allocation2 + $0x8] sm:$0xff] }
  0x18   :  { %s876_s20 = sld [smem:[#allocation6 + $0x1]] }
  0x19   :  { %s878_s21 = sld [smem:[#allocation6 + $0x2]] }
  0x1a   :  { %s880_s22 = sld [smem:[#allocation6 + $0x3]] }
  0x1b   :  { %s882_s23 = sld [smem:[#allocation6 + $0x4]] }
  0x1c   :  { %s884_s0 = sld [smem:[#allocation6 + $0x5]] }
  0x1d   :  { %s886_s24 = sld [smem:[#allocation6 + $0x6]]  ;;  %v191_v1 = vstv %s874_s19 }
  0x1e   :  { %s888_s1 = sld [smem:[#allocation6 + $0x7]]  ;;  %v195_v3 = vstv %s876_s20  ;;  %v192_v5 = vmul.f32 %v191_v1, %v1000_v0 }
  0x1f   :  { %s890_s25 = sld [smem:[#allocation6 + $0x8]]  ;;  %v199_v4 = vstv %s878_s21  ;;  %v196_v8 = vmul.f32 %v195_v3, %v1005_v2 }
  0x20   :  { %s892_s26 = sld [smem:[#allocation6 + $0x9]]  ;;  %v203_v6 = vstv %s880_s22  ;;  %v200_v9 = vmul.f32 %v199_v4, %v1000_v0 }
  0x21   :  { %s894_s27 = sld [smem:[#allocation6 + $0xa]]  ;;  %v207_v7 = vstv %s882_s23  ;;  %v204_v16 = vmul.f32 %v203_v6, %v1005_v2 }
  0x22   :  { %s896_s28 = sld [smem:[#allocation6 + $0xb]]  ;;  %v211_v10 = vstv %s884_s0  ;;  %v208_v17 = vmul.f32 %v207_v7, %v1000_v0 }
  0x23   :  { %s898_s29 = sld [smem:[#allocation6 + $0xc]]  ;;  %v215_v11 = vstv %s886_s24  ;;  %v212_v20 = vmul.f32 %v211_v10, %v1005_v2 }
  0x24   :  { %s900_s30 = sld [smem:[#allocation6 + $0xd]]  ;;  %v219_v12 = vstv %s888_s1  ;;  %v216_v21 = vmul.f32 %v215_v11, %v1000_v0 }
  0x25   :  { %s902_s3 = sld [smem:[#allocation6 + $0xe]]  ;;  %v223_v13 = vstv %s890_s25  ;;  %v220_v24 = vmul.f32 %v219_v12, %v1005_v2 }
  0x26   :  { %s904_s4 = sld [smem:[#allocation6 + $0xf]]  ;;  %v227_v14 = vstv %s892_s26  ;;  %v224_v25 = vmul.f32 %v223_v13, %v1000_v0 }
  0x27   :  { %s906_s5 = sld [smem:[#allocation6 + $0x10]]  ;;  %v231_v15 = vstv %s894_s27  ;;  %v228_v26 = vmul.f32 %v227_v14, %v1005_v2 }
  0x28   :  { %s908_s6 = sld [smem:[#allocation6 + $0x11]]  ;;  %v235_v18 = vstv %s896_s28  ;;  %v232_v27 = vmul.f32 %v231_v15, %v1000_v0 }
  0x29   :  { %s910_s7 = sld [smem:[#allocation6 + $0x12]]  ;;  %v239_v19 = vstv %s898_s29  ;;  %v236_v29 = vmul.f32 %v235_v18, %v1005_v2 }
  0x2a   :  { %s912_s8 = sld [smem:[#allocation6 + $0x13]]  ;;  %v243_v22 = vstv %s900_s30  ;;  %v240_v30 = vmul.f32 %v239_v19, %v1000_v0 }
  0x2b   :  { %s914_s9 = sld [smem:[#allocation6 + $0x14]]  ;;  %v247_v23 = vstv %s902_s3  ;;  %v244_v34 = vmul.f32 %v243_v22, %v1005_v2 }
  0x2c   :  { %1758 = sst [smem:[#allocation11_spill]] %s904_s4  ;;  %v248_v35 = vmul.f32 %v247_v23, %v1000_v0 }
  0x2d   :  { %s916_s10 = sld [smem:[#allocation6 + $0x15]]  ;;  %v255_v31 = vstv %s906_s5 }
  0x2e   :  { %1759 = sst [smem:[#allocation12_spill]] %s908_s6  ;;  %v256_v43 = vmul.f32 %v255_v31, %v1000_v0 }
  0x2f   :  { %1760 = sst [smem:[#allocation13_spill]] %s910_s7 }
  0x30   :  { %1761 = sst [smem:[#allocation14_spill]] %s912_s8 }
  0x31   :  { %s918_s11 = sld [smem:[#allocation6 + $0x16]]  ;;  %v193_v28 = vstv %s914_s9 }
  0x32   :  { %s920_s12 = sld [smem:[#allocation6 + $0x17]]  ;;  %v194_v40 = vadd.f32 %v193_v28, %v192_v5 }
  0x33   :  { %s922_s13 = sld [smem:[#allocation6 + $0x18]]  ;;  %v201_v32 = vstv %s916_s10 }
  0x34   :  { %s924_s14 = sld [smem:[#allocation6 + $0x19]]  ;;  %v202_v44 = vadd.f32 %v201_v32, %v200_v9  ;;  %v197_v56 = vadd.f32 %v196_v8, %v194_v40 }
  0x35   :  { %s926_s15 = sld [smem:[#allocation6 + $0x1a]] }
  0x36   :  { %s928_s16 = sld [smem:[#allocation6 + $0x1b]]  ;;  %v205_v59 = vadd.f32 %v204_v16, %v202_v44  ;;  %v1094_v6 = vmax.f32 %v197_v56, 0.0 }
  0x37   :  { %s930_s17 = sld [smem:[#allocation6 + $0x1c]]  ;;  %v209_v33 = vstv %s918_s11 }
  0x38   :  { %s932_s18 = sld [smem:[#allocation6 + $0x1d]]  ;;  %v217_v36 = vstv %s920_s12  ;;  %v210_v45 = vadd.f32 %v209_v33, %v208_v17  ;;  %v1098_v8 = vmax.f32 %v205_v59, 0.0 }
  0x39   :  { %1762 = sst [smem:[#allocation15_spill]] %s922_s13  ;;  %v218_v48 = vadd.f32 %v217_v36, %v216_v21 }
  0x3a   :  { %1763 = sst [smem:[#allocation16_spill]] %s924_s14  ;;  %v213_v60 = vadd.f32 %v212_v20, %v210_v45 }
  0x3b   :  { %1764 = sst [smem:[#allocation17_spill]] %s926_s15  ;;  %v221_v63 = vadd.f32 %v220_v24, %v218_v48 }
  0x3c   :  { %1765 = sst [smem:[#allocation18_spill]] %s928_s16  ;;  %v1100_v9 = vmax.f32 %v213_v60, 0.0 }
  0x3d   :  { %1766 = sst [smem:[#allocation19_spill]] %s930_s17  ;;  %v1105_v11 = vmax.f32 %v221_v63, 0.0 }
  0x3e   :  { %1767 = sst [smem:[#allocation20_spill]] %s932_s18 }
  0x3f   :  { %s934_s2 = sld [smem:[#allocation6 + $0x1e]] }
  0x40   :  { %s936_s8 = sld [smem:[#allocation6 + $0x1f]] }
  0x41   :  { %s938_s6 = sld [smem:[#allocation6 + $0x20]] }
  0x42   :  { %s940_s7 = sld [smem:[#allocation6 + $0x21]] }
  0x43   :  { %s942_s4 = sld [smem:[#allocation6 + $0x22]] }
  0x44   :  { %s944_s13 = sld [smem:[#allocation6 + $0x23]] }
  0x45   :  { %1768 = sst [smem:[#allocation21_spill]] %s934_s2 }
  0x46   :  { %1769 = sst [smem:[#allocation22_spill]] %s936_s8 }
  0x47   :  { %1770 = sst [smem:[#allocation23_spill]] %s938_s6 }
  0x48   :  { %1771 = sst [smem:[#allocation24_spill]] %s940_s7 }
  0x49   :  { %1772 = sst [smem:[#allocation25_spill]] %s942_s4 }
  0x4a   :  { %1773 = sst [smem:[#allocation26_spill]] %s944_s13 }
  0x4b   :  { %s946_s14 = sld [smem:[#allocation6 + $0x24]] }
  0x4c   :  { %s948_s15 = sld [smem:[#allocation6 + $0x25]] }
  0x4d   :  { %s950_s16 = sld [smem:[#allocation6 + $0x26]] }
  0x4e   :  { %s952_s17 = sld [smem:[#allocation6 + $0x27]] }
  0x4f   :  { %s954_s18 = sld [smem:[#allocation6 + $0x28]] }
  0x50   :  { %s956_s2 = sld [smem:[#allocation6 + $0x29]] }
  0x51   :  { %1774 = sst [smem:[#allocation27_spill]] %s946_s14 }
  0x52   :  { %1775 = sst [smem:[#allocation28_spill]] %s948_s15 }
  0x53   :  { %s958_s8 = sld [smem:[#allocation6 + $0x2a]] }
  0x54   :  { %1776 = sst [smem:[#allocation29_spill]] %s952_s17 }
  0x55   :  { %1777 = sst [smem:[#allocation30_spill]] %s954_s18 }
  0x56   :  { %1778 = sst [smem:[#allocation31_spill]] %s956_s2 }
  0x57   :  { %s960_s6 = sld [smem:[#allocation6 + $0x2b]] }
  0x58   :  { %s962_s7 = sld [smem:[#allocation6 + $0x2c]] }
  0x59   :  { %1779 = sst [smem:[#allocation32_spill]] %s958_s8 }
  0x5a   :  { %s964_s4 = sld [smem:[#allocation6 + $0x2d]] }
  0x5b   :  { %s966_s13 = sld [smem:[#allocation6 + $0x2e]] }
  0x5c   :  { %s968_s14 = sld [smem:[#allocation6 + $0x2f]] }
  0x5d   :  { %s970_s15 = sld [smem:[#allocation6 + $0x30]]  ;;  %v313_v40 = vstv %s960_s6 }
  0x5e   :  { %1780 = sst [smem:[#allocation33_spill]] %s962_s7 }
  0x5f   :  { %s972_s17 = sld [smem:[#allocation6 + $0x31]] }
  0x60   :  { %1781 = sst [smem:[#allocation34_spill]] %s964_s4 }
  0x61   :  { %1782 = sst [smem:[#allocation35_spill]] %s966_s13 }
  0x62   :  { %1783 = sst [smem:[#allocation36_spill]] %s968_s14 }
  0x63   :  { %1784 = sst [smem:[#allocation37_spill]] %s970_s15 }
  0x64   :  { %s974_s18 = sld [smem:[#allocation6 + $0x32]] }
  0x65   :  { %1785 = sst [smem:[#allocation38_spill]] %s972_s17 }
  0x66   :  { %s976_s2 = sld [smem:[#allocation6 + $0x33]] }
  0x67   :  { %s978_s8 = sld [smem:[#allocation6 + $0x34]] }
  0x68   :  { %s980_s7 = sld [smem:[#allocation6 + $0x35]] }
  0x69   :  { %s982_s4 = sld [smem:[#allocation6 + $0x36]] }
  0x6a   :  { %1786 = sst [smem:[#allocation39_spill]] %s974_s18 }
  0x6b   :  { %s984_s13 = sld [smem:[#allocation6 + $0x37]] }
  0x6c   :  { %1787 = sst [smem:[#allocation40_spill]] %s976_s2 }
  0x6d   :  { %1788 = sst [smem:[#allocation41_spill]] %s978_s8 }
  0x6e   :  { %1789 = sst [smem:[#allocation42_spill]] %s980_s7 }
  0x6f   :  { %s986_s14 = sld [smem:[#allocation6 + $0x38]] }
  0x70   :  { %s988_s15 = sld [smem:[#allocation6 + $0x39]] }
  0x71   :  { %s990_s17 = sld [smem:[#allocation6 + $0x3a]] }
  0x72   :  { %s992_s18 = sld [smem:[#allocation6 + $0x3b]] }
  0x73   :  { %s994_s2 = sld [smem:[#allocation6 + $0x3c]] }
  0x74   :  { %s996_s8 = sld [smem:[#allocation6 + $0x3d]] }
  0x75   :  { %1790 = sst [smem:[#allocation43_spill]] %s986_s14 }
  0x76   :  { %s998_s7 = sld [smem:[#allocation6 + $0x3e]] }
  0x77   :  { %s1003_s14 = sld [smem:[#allocation6 + $0x3f]] }
  0x78   :  { %s1016_s19 = sld [smem:[#allocation6 + $0x42]] }
  0x79   :  { %1791 = sst [smem:[#allocation44_spill]] %s994_s2 }
  0x7a   :  { %1792 = sst [smem:[#allocation45_spill]] %s996_s8 }
  0x7b   :  { %s1009_s2 = sld [smem:[#allocation6 + $0x40]] }
  0x7c   :  { %s1011_s8 = sld [smem:[#allocation6 + $0x41]] }
  0x7d   :  { %s1022_s20 = sld [smem:[#allocation6 + $0x43]] }
  0x7e   :  { %s1028_s21 = sld [smem:[#allocation6 + $0x44]] }
  0x7f   :  { %s1034_s22 = sld [smem:[#allocation6 + $0x45]] }
  0x80   :  { %s1040_s23 = sld [smem:[#allocation6 + $0x46]] }
  0x81   :  { %s1793_s0 = sld [smem:[#allocation15_spill]] }
  0x82   :  { %s1794_s24 = sld [smem:[#allocation11_spill]] }
  0x83   :  { %s1795_s1 = sld [smem:[#allocation13_spill]] }
  0x84   :  { %s1046_s25 = sld [smem:[#allocation6 + $0x47]] }
  0x85   :  { %s1797_s26 = sld [smem:[#allocation16_spill]] }
  0x86   :  { %s1798_s27 = sld [smem:[#allocation17_spill]] }
  0x87   :  { %s1052_s28 = sld [smem:[#allocation6 + $0x48]]  ;;  %v225_v37 = vstv %s1793_s0 }
  0x88   :  { %s1799_s29 = sld [smem:[#allocation18_spill]]  ;;  %v251_v38 = vstv %s1794_s24  ;;  %v226_v49 = vadd.f32 %v225_v37, %v224_v25 }
  0x89   :  { %s1800_s30 = sld [smem:[#allocation12_spill]]  ;;  %v263_v39 = vstv %s1795_s1  ;;  %v252_v58 = vmul.f32 %v251_v38, %v1005_v2 }
  0x8a   :  { %1796 = sst [smem:[#allocation15_spill]] %s1046_s25  ;;  %v264_v51 = vmul.f32 %v263_v39, %v1000_v0  ;;  %v229_v0 = vadd.f32 %v228_v26, %v226_v49 }
  0x8b   :  { %s1058_s3 = sld [smem:[#allocation6 + $0x49]]  ;;  %v233_v41 = vstv %s1797_s26 }
  0x8c   :  { %s1801_s9 = sld [smem:[#allocation19_spill]]  ;;  %v241_v42 = vstv %s1798_s27  ;;  %v234_v52 = vadd.f32 %v233_v41, %v232_v27  ;;  %v1107_v12 = vmax.f32 %v229_v0, 0.0  ;;  %v351_v0 = vstv %s984_s13 }
  0x8d   :  { %s1064_s25 = sld [smem:[#allocation6 + $0x4a]]  ;;  %v242_v53 = vadd.f32 %v241_v42, %v240_v30  ;;  %v296_v30 = vstv %s950_s16 }
  0x8e   :  { %s1802_s5 = sld [smem:[#allocation20_spill]]  ;;  %v249_v46 = vstv %s1799_s29  ;;  %v237_v4 = vadd.f32 %v236_v29, %v234_v52 }
  0x8f   :  { %s1803_s10 = sld [smem:[#allocation14_spill]]  ;;  %v259_v47 = vstv %s1800_s30  ;;  %v250_v57 = vadd.f32 %v249_v46, %v248_v35  ;;  %v245_v5 = vadd.f32 %v244_v34, %v242_v53 }
  0x90   :  { %s1069_s11 = sld [smem:[#allocation6 + $0x4b]]  ;;  %v260_v62 = vmul.f32 %v259_v47, %v1005_v2  ;;  %v1112_v15 = vmax.f32 %v237_v4, 0.0 }
  0x91   :  { %s1073_s12 = sld [smem:[#allocation6 + $0x4c]]  ;;  %v253_v7 = vadd.f32 %v252_v58, %v250_v57  ;;  %v1114_v16 = vmax.f32 %v245_v5, 0.0 }
  0x92   :  { %v257_v50 = vstv %s1801_s9  ;;  %s1077_s0 = sld [smem:[#allocation6 + $0x4d]] }
  0x93   :  { %s1081_s24 = sld [smem:[#allocation6 + $0x4e]]  ;;  %v258_v61 = vadd.f32 %v257_v50, %v256_v43  ;;  %v1120_v19 = vmax.f32 %v253_v7, 0.0  ;;  %v360_v7 = vstv %s990_s17 }
  0x94   :  { %v265_v54 = vstv %s1802_s5  ;;  %s1084_s1 = sld [smem:[#allocation6 + $0x4f]] }
  0x95   :  { %v267_v55 = vstv %s1803_s10  ;;  %s1808_s26 = sld [smem:[#allocation21_spill]]  ;;  %v266_v1 = vadd.f32 %v265_v54, %v264_v51  ;;  %v1198_v51 = vmul.f32 %v313_v40, %v1105_v11  ;;  %v383_v40 = vstv %s1011_s8 }
  0x96   :  { %s1087_s27 = sld [smem:[#allocation6 + $0x50]]  ;;  %v268_v3 = vmul.f32 %v267_v55, %v1005_v2  ;;  %v261_v2 = vadd.f32 %v260_v62, %v258_v61  ;;  %v348_v62 = vstv %s982_s4 }
  0x97   :  { %1804 = sst [smem:[#allocation11_spill]] %s1073_s12 }
  0x98   :  { %1805 = sst [smem:[#allocation13_spill]] %s1077_s0  ;;  %v269_v13 = vadd.f32 %v268_v3, %v266_v1  ;;  %v1129_v23 = vmax.f32 %v261_v2, 0.0  ;;  %v357_v3 = vstv %s988_s15  ;;  %v363_v2 = vstv %s992_s18 }
  0x99   :  { %1806 = sst [smem:[#allocation16_spill]] %s1081_s24 }
  0x9a   :  { %1807 = sst [smem:[#allocation17_spill]] %s1084_s1  ;;  %1826 = vst [vmem:[#allocation46_spill] sm:$0xff] %v1129_v23  ;;  %v1138_v27 = vmax.f32 %v269_v13, 0.0  ;;  %v1170_v39 = vmul.f32 %v296_v30, %v1129_v23  ;;  %v1251_v13 = vmul.f32 %v348_v62, %v1107_v12 }
  0x9b   :  { %s1810_s29 = sld [smem:[#allocation22_spill]]  ;;  %v271_v10 = vstv %s1808_s26 }
  0x9c   :  { %1809 = sst [smem:[#allocation18_spill]] %s1087_s27  ;;  %v1123_v20 = vmul.f32 %v271_v10, %v1094_v6  ;;  %1830 = vst [vmem:[#allocation47_spill] sm:$0xff] %v1138_v27  ;;  %1840 = vst [vmem:[#allocation49_spill] sm:$0xff] %v1170_v39  ;;  %v1273_v30 = vmul.f32 %v363_v2, %v1138_v27 }
  0x9d   :  { %s1090_s30 = sld [smem:[#allocation6 + $0x51]] }
  0x9e   :  { %s1092_s9 = sld [smem:[#allocation6 + $0x52]]  ;;  %1855 = vst [vmem:[#allocation57_spill] sm:$0xff] %v1273_v30 }
  0x9f   :  { %s1813_s5 = sld [smem:[#allocation23_spill]] }
  0xa0   :  { %s1814_s10 = sld [smem:[#allocation24_spill]] }
  0xa1   :  { %s1096_s1 = sld [smem:[#allocation6 + $0x53]]  ;;  %v275_v14 = vstv %s1810_s29 }
  0xa2   :  { %s1816_s27 = sld [smem:[#allocation25_spill]]  ;;  %v1132_v24 = vmul.f32 %v275_v14, %v1098_v8 }
  0xa3   :  { %1811 = sst [smem:[#allocation12_spill]] %s1090_s30 }
  0xa4   :  { %1812 = sst [smem:[#allocation19_spill]] %s1092_s9 }
  0xa5   :  { %s1817_s24 = sld [smem:[#allocation26_spill]]  ;;  %v278_v17 = vstv %s1813_s5 }
  0xa6   :  { %s1103_s30 = sld [smem:[#allocation6 + $0x54]]  ;;  %v281_v18 = vstv %s1814_s10  ;;  %v1141_v28 = vmul.f32 %v278_v17, %v1100_v9 }
  0xa7   :  { %1815 = sst [smem:[#allocation20_spill]] %s1096_s1  ;;  %v1144_v29 = vmul.f32 %v281_v18, %v1105_v11  ;;  %v1258_v18 = vmul.f32 %v351_v0, %v1112_v15  ;;  %v406_v0 = vstv %s1052_s28 }
  0xa8   :  { %s1819_s9 = sld [smem:[#allocation27_spill]]  ;;  %v284_v21 = vstv %s1816_s27 }
  0xa9   :  { %s1820_s0 = sld [smem:[#allocation28_spill]]  ;;  %v1150_v31 = vmul.f32 %v284_v21, %v1107_v12 }
  0xaa   :  { %s1110_s12 = sld [smem:[#allocation6 + $0x55]] }
  0xab   :  { %s1118_s26 = sld [smem:[#allocation6 + $0x56]]  ;;  %v287_v22 = vstv %s1817_s24 }
  0xac   :  { %1818 = sst [smem:[#allocation14_spill]] %s1103_s30  ;;  %v1153_v32 = vmul.f32 %v287_v22, %v1112_v15  ;;  %v1264_v22 = vmul.f32 %v357_v3, %v1120_v19 }
  0xad   :  { %s1823_s30 = sld [smem:[#allocation29_spill]] }
  0xae   :  { %s1824_s1 = sld [smem:[#allocation30_spill]]  ;;  %v290_v25 = vstv %s1819_s9  ;;  %1853 = vst [vmem:[#allocation55_spill] sm:$0xff] %v1264_v22 }
  0xaf   :  { %s1127_s29 = sld [smem:[#allocation6 + $0x57]]  ;;  %v293_v26 = vstv %s1820_s0  ;;  %v1160_v35 = vmul.f32 %v290_v25, %v1114_v16  ;;  %v374_v25 = vstv %s998_s7 }
  0xb0   :  { %1821 = sst [smem:[#allocation21_spill]] %s1110_s12  ;;  %v1163_v36 = vmul.f32 %v293_v26, %v1120_v19  ;;  %v1270_v26 = vmul.f32 %v360_v7, %v1129_v23 }
  0xb1   :  { %1822 = sst [smem:[#allocation22_spill]] %s1118_s26 }
  0xb2   :  { %s1827_s5 = sld [smem:[#allocation31_spill]]  ;;  %1836 = vst [vmem:[#allocation48_spill] sm:$0xff] %v1163_v36  ;;  %1854 = vst [vmem:[#allocation56_spill] sm:$0xff] %v1270_v26 }
  0xb3   :  { %s1828_s10 = sld [smem:[#allocation32_spill]]  ;;  %v299_v33 = vstv %s1823_s30 }
  0xb4   :  { %s1136_s26 = sld [smem:[#allocation6 + $0x58]]  ;;  %v303_v34 = vstv %s1824_s1  ;;  %v1178_v43 = vmul.f32 %v299_v33, %v1138_v27  ;;  %v377_v33 = vstv %s1003_s14 }
  0xb5   :  { %1825 = sst [smem:[#allocation23_spill]] %s1127_s29  ;;  %v1181_v44 = vmul.f32 %v303_v34, %v1094_v6  ;;  %v380_v34 = vstv %s1009_s2 }
  0xb6   :  { %s1831_s24 = sld [smem:[#allocation33_spill]]  ;;  %1842 = vst [vmem:[#allocation50_spill] sm:$0xff] %v1178_v43 }
  0xb7   :  { %s1832_s27 = sld [smem:[#allocation34_spill]] }
  0xb8   :  { %s1147_s29 = sld [smem:[#allocation6 + $0x59]]  ;;  %v307_v37 = vstv %s1827_s5 }
  0xb9   :  { %s1834_s0 = sld [smem:[#allocation35_spill]]  ;;  %v310_v38 = vstv %s1828_s10  ;;  %v1188_v47 = vmul.f32 %v307_v37, %v1098_v8 }
  0xba   :  { %1829 = sst [smem:[#allocation24_spill]] %s1136_s26  ;;  %v1191_v48 = vmul.f32 %v310_v38, %v1100_v9 }
  0xbb   :  { %s1835_s9 = sld [smem:[#allocation36_spill]] }
  0xbc   :  { %s1157_s26 = sld [smem:[#allocation6 + $0x5a]]  ;;  %v316_v41 = vstv %s1831_s24 }
  0xbd   :  { %s1837_s16 = sld [smem:[#allocation37_spill]]  ;;  %v319_v42 = vstv %s1832_s27  ;;  %v1201_v52 = vmul.f32 %v316_v41, %v1107_v12  ;;  %v386_v41 = vstv %s1016_s19 }
  0xbe   :  { %1833 = sst [smem:[#allocation25_spill]] %s1147_s29  ;;  %v1204_v53 = vmul.f32 %v319_v42, %v1112_v15  ;;  %v1290_v42 = vmul.f32 %v374_v25, %v1100_v9  ;;  %v1311_v62 = vmul.f32 %v386_v41, %v1114_v16 }
  0xbf   :  { %s1838_s29 = sld [smem:[#allocation38_spill]]  ;;  %v322_v45 = vstv %s1834_s0 }
  0xc0   :  { %s1167_s12 = sld [smem:[#allocation6 + $0x5b]]  ;;  %v1210_v55 = vmul.f32 %v322_v45, %v1114_v16  ;;  %v389_v45 = vstv %s1022_s20  ;;  %1859 = vst [vmem:[#allocation59_spill] sm:$0xff] %v1311_v62 }
  0xc1   :  { %s1841_s1 = sld [smem:[#allocation39_spill]]  ;;  %v325_v46 = vstv %s1835_s9  ;;  %v1318_v3 = vmul.f32 %v389_v45, %v1120_v19 }
  0xc2   :  { %s1175_s30 = sld [smem:[#allocation6 + $0x5c]]  ;;  %v1213_v56 = vmul.f32 %v325_v46, %v1120_v19  ;;  %v392_v46 = vstv %s1028_s21 }
  0xc3   :  { %s1843_s5 = sld [smem:[#allocation40_spill]]  ;;  %v328_v49 = vstv %s1837_s16  ;;  %1862 = vst [vmem:[#allocation60_spill] sm:$0xff] %v1318_v3  ;;  %v1321_v7 = vmul.f32 %v392_v46, %v1129_v23 }
  0xc4   :  { %s1844_s10 = sld [smem:[#allocation41_spill]]  ;;  %1847 = vst [vmem:[#allocation51_spill] sm:$0xff] %v1213_v56  ;;  %v1220_v59 = vmul.f32 %v328_v49, %v1129_v23  ;;  %v395_v49 = vstv %s1034_s22 }
  0xc5   :  { %s1845_s6 = sld [smem:[#allocation42_spill]]  ;;  %v331_v50 = vstv %s1838_s29  ;;  %1864 = vst [vmem:[#allocation61_spill] sm:$0xff] %v1321_v7  ;;  %v1324_v2 = vmul.f32 %v395_v49, %v1138_v27 }
  0xc6   :  { %1839 = sst [smem:[#allocation26_spill]] %s1167_s12  ;;  %1848 = vst [vmem:[#allocation52_spill] sm:$0xff] %v1220_v59  ;;  %v1223_v60 = vmul.f32 %v331_v50, %v1138_v27  ;;  %v1298_v50 = vmul.f32 %v377_v33, %v1105_v11  ;;  %v415_v33 = vstv %s1069_s11 }
  0xc7   :  { %s1185_s12 = sld [smem:[#allocation6 + $0x5d]]  ;;  %v335_v54 = vstv %s1841_s1  ;;  %1866 = vst [vmem:[#allocation62_spill] sm:$0xff] %v1324_v2 }
  0xc8   :  { %s1195_s24 = sld [smem:[#allocation6 + $0x5e]]  ;;  %1849 = vst [vmem:[#allocation53_spill] sm:$0xff] %v1223_v60  ;;  %v1230_v63 = vmul.f32 %v335_v54, %v1094_v6  ;;  %v1301_v54 = vmul.f32 %v380_v34, %v1107_v12 }
  0xc9   :  { %s1846_s27 = sld [smem:[#allocation43_spill]]  ;;  %v339_v57 = vstv %s1843_s5 }
  0xca   :  { %s1207_s0 = sld [smem:[#allocation6 + $0x5f]]  ;;  %v342_v58 = vstv %s1844_s10  ;;  %v1238_v4 = vmul.f32 %v339_v57, %v1098_v8  ;;  %v399_v57 = vstv %s1040_s23 }
  0xcb   :  { %s1217_s29 = sld [smem:[#allocation6 + $0x60]]  ;;  %v345_v61 = vstv %s1845_s6  ;;  %v1241_v5 = vmul.f32 %v342_v58, %v1100_v9 }
  0xcc   :  { %s1850_s9 = sld [smem:[#allocation44_spill]]  ;;  %v1248_v10 = vmul.f32 %v345_v61, %v1105_v11  ;;  %v1308_v61 = vmul.f32 %v383_v40, %v1112_v15  ;;  %v1340_v40 = vmul.f32 %v406_v0, %v1100_v9  ;;  %v1358_v0 = vmul.f32 %v415_v33, %v1112_v15 }
  0xcd   :  { %s1851_s16 = sld [smem:[#allocation45_spill]]  ;;  %v473_v22 = vstv %s1185_s12 }
  0xce   :  { %s1227_s1 = sld [smem:[#allocation6 + $0x61]]  ;;  %1858 = vst [vmem:[#allocation58_spill] sm:$0xff] %v1308_v61  ;;  %1873 = vst [vmem:[#allocation63_spill] sm:$0xff] %v1358_v0  ;;  %v476_v39 = vstv %s1195_s24 }
  0xcf   :  { %v354_v1 = vstv %s1846_s27  ;;  %s1235_s5 = sld [smem:[#allocation6 + $0x62]] }
  0xd0   :  { %s1245_s4 = sld [smem:[#allocation6 + $0x63]]  ;;  %v1261_v21 = vmul.f32 %v354_v1, %v1114_v16  ;;  %v409_v1 = vstv %s1058_s3 }
  0xd1   :  { %s1255_s13 = sld [smem:[#allocation6 + $0x64]]  ;;  %v1343_v41 = vmul.f32 %v409_v1, %v1105_v11  ;;  %v482_v62 = vstv %s1217_s29 }
  0xd2   :  { %v367_v14 = vstv %s1850_s9  ;;  %1852 = vst [vmem:[#allocation54_spill] sm:$0xff] %v1261_v21  ;;  %s1267_s15 = sld [smem:[#allocation6 + $0x65]] }
  0xd3   :  { %v371_v17 = vstv %s1851_s16  ;;  %s1856_s17 = sld [smem:[#allocation15_spill]]  ;;  %v1280_v37 = vmul.f32 %v367_v14, %v1094_v6  ;;  %v412_v14 = vstv %s1064_s25 }
  0xd4   :  { %s1277_s18 = sld [smem:[#allocation6 + $0x66]]  ;;  %v1283_v38 = vmul.f32 %v371_v17, %v1098_v8  ;;  %v1330_v17 = vmul.f32 %v399_v57, %v1094_v6  ;;  %v1350_v49 = vmul.f32 %v412_v14, %v1107_v12 }
  0xd5   :  { %s1287_s7 = sld [smem:[#allocation6 + $0x67]] }
  0xd6   :  { %s1295_s2 = sld [smem:[#allocation6 + $0x68]] }
  0xd7   :  { %s1857_s8 = sld [smem:[#allocation11_spill]]  ;;  %v495_v56 = vstv %s1255_s13 }
  0xd8   :  { %s1305_s14 = sld [smem:[#allocation6 + $0x69]]  ;;  %v499_v0 = vstv %s1267_s15 }
  0xd9   :  { %v403_v58 = vstv %s1856_s17  ;;  %s1860_s19 = sld [smem:[#allocation13_spill]] }
  0xda   :  { %s1861_s20 = sld [smem:[#allocation16_spill]]  ;;  %v1333_v25 = vmul.f32 %v403_v58, %v1098_v8 }
  0xdb   :  { %s1315_s21 = sld [smem:[#allocation6 + $0x6a]] }
  0xdc   :  { %s1863_s22 = sld [smem:[#allocation17_spill]] }
  0xdd   :  { %s1865_s23 = sld [smem:[#allocation18_spill]]  ;;  %v418_v34 = vstv %s1857_s8 }
  0xde   :  { %s1867_s10 = sld [smem:[#allocation12_spill]]  ;;  %v1361_v1 = vmul.f32 %v418_v34, %v1114_v16  ;;  %v511_v21 = vstv %s1305_s14 }
  0xdf   :  { %s1327_s6 = sld [smem:[#allocation6 + $0x6b]]  ;;  %v421_v45 = vstv %s1860_s19 }
  0xe0   :  { %s1868_s28 = sld [smem:[#allocation19_spill]]  ;;  %v424_v46 = vstv %s1861_s20  ;;  %1874 = vst [vmem:[#allocation64_spill] sm:$0xff] %v1361_v1  ;;  %v1368_v14 = vmul.f32 %v421_v45, %v1120_v19  ;;  %v470_v1 = vstv %s1175_s30 }
  0xe1   :  { %s1869_s3 = sld [smem:[#allocation20_spill]]  ;;  %v1371_v60 = vmul.f32 %v424_v46, %v1129_v23 }
  0xe2   :  { %s1337_s27 = sld [smem:[#allocation6 + $0x6c]]  ;;  %v427_v57 = vstv %s1863_s22  ;;  %1877 = vst [vmem:[#allocation65_spill] sm:$0xff] %v1368_v14 }
  0xe3   :  { %s1870_s25 = sld [smem:[#allocation14_spill]]  ;;  %v431_v58 = vstv %s1865_s23  ;;  %1878 = vst [vmem:[#allocation66_spill] sm:$0xff] %v1371_v60  ;;  %v1378_v34 = vmul.f32 %v427_v57, %v1138_v27 }
  0xe4   :  { %s1871_s9 = sld [smem:[#allocation21_spill]]  ;;  %v435_v2 = vstv %s1867_s10  ;;  %v1381_v43 = vmul.f32 %v431_v58, %v1094_v6 }
  0xe5   :  { %s1347_s16 = sld [smem:[#allocation6 + $0x6d]]  ;;  %1880 = vst [vmem:[#allocation67_spill] sm:$0xff] %v1378_v34  ;;  %v1384_v45 = vmul.f32 %v435_v2, %v1098_v8 }
  0xe6   :  { %s1872_s11 = sld [smem:[#allocation22_spill]]  ;;  %v438_v30 = vstv %s1868_s28 }
  0xe7   :  { %s1355_s17 = sld [smem:[#allocation6 + $0x6e]]  ;;  %v441_v7 = vstv %s1869_s3  ;;  %v1390_v60 = vmul.f32 %v438_v30, %v1100_v9  ;;  %v463_v30 = vstv %s1157_s26 }
  0xe8   :  { %s1875_s8 = sld [smem:[#allocation23_spill]]  ;;  %v1393_v14 = vmul.f32 %v441_v7, %v1105_v11  ;;  %v520_v36 = vstv %s1337_s27 }
  0xe9   :  { %s1876_s19 = sld [smem:[#allocation24_spill]]  ;;  %v444_v26 = vstv %s1870_s25 }
  0xea   :  { %s1365_s20 = sld [smem:[#allocation6 + $0x6f]]  ;;  %v447_v33 = vstv %s1871_s9  ;;  %v1400_v58 = vmul.f32 %v444_v26, %v1107_v12 }
  0xeb   :  { %s1879_s22 = sld [smem:[#allocation25_spill]]  ;;  %v1403_v2 = vmul.f32 %v447_v33, %v1112_v15 }
  0xec   :  { %s1375_s23 = sld [smem:[#allocation6 + $0x70]]  ;;  %v450_v46 = vstv %s1872_s11  ;;  %1882 = vst [vmem:[#allocation68_spill] sm:$0xff] %v1400_v58 }
  0xed   :  { %s1881_s10 = sld [smem:[#allocation26_spill]]  ;;  %1883 = vst [vmem:[#allocation69_spill] sm:$0xff] %v1403_v2  ;;  %v1410_v7 = vmul.f32 %v450_v46, %v1114_v16  ;;  %v479_v2 = vstv %s1207_s0 }
  0xee   :  { %s1387_s28 = sld [smem:[#allocation6 + $0x71]]  ;;  %v453_v57 = vstv %s1875_s8 }
  0xef   :  { %v456_v34 = vstv %s1876_s19  ;;  %s1397_s3 = sld [smem:[#allocation6 + $0x72]]  ;;  %1884 = vst [vmem:[#allocation70_spill] sm:$0xff] %v1410_v7  ;;  %v1418_v26 = vmul.f32 %v453_v57, %v1120_v19  ;;  %v1431_v7 = vmul.f32 %v463_v30, %v1094_v6  ;;  %v485_v57 = vstv %s1227_s1 }
  0xf0   :  { %s1407_s25 = sld [smem:[#allocation6 + $0x73]]  ;;  %v1421_v33 = vmul.f32 %v456_v34, %v1129_v23  ;;  %v488_v30 = vstv %s1235_s5 }
  0xf1   :  { %v459_v3 = vstv %s1879_s22  ;;  %s1415_s9 = sld [smem:[#allocation6 + $0x74]]  ;;  %1885 = vst [vmem:[#allocation71_spill] sm:$0xff] %v1418_v26  ;;  %v1453_v26 = vmul.f32 %v479_v2, %v1112_v15  ;;  %v1470_v2 = vmul.f32 %v488_v30, %v1129_v23  ;;  %v1488_v30 = vmul.f32 %v499_v0, %v1098_v8 }
  0xf2   :  { %1886 = vst [vmem:[#allocation72_spill] sm:$0xff] %v1421_v33  ;;  %s1425_s26 = sld [smem:[#allocation6 + $0x75]]  ;;  %v1428_v46 = vmul.f32 %v459_v3, %v1138_v27  ;;  %v1441_v33 = vmul.f32 %v470_v1, %v1100_v9  ;;  %v1444_v3 = vmul.f32 %v473_v22, %v1105_v11  ;;  %v1460_v1 = vmul.f32 %v482_v62, %v1114_v16 }
  0xf3   :  { %v467_v59 = vstv %s1881_s10  ;;  %s1435_s12 = sld [smem:[#allocation6 + $0x76]]  ;;  %1889 = vst [vmem:[#allocation75_spill] sm:$0xff] %v1453_v26  ;;  %v1463_v22 = vmul.f32 %v485_v57, %v1120_v19  ;;  %1892 = vst [vmem:[#allocation78_spill] sm:$0xff] %v1470_v2  ;;  %v505_v26 = vstv %s1287_s7  ;;  %v1481_v57 = vmul.f32 %v495_v56, %v1094_v6 }
  0xf4   :  { %1887 = vst [vmem:[#allocation73_spill] sm:$0xff] %v1428_v46  ;;  %v1438_v34 = vmul.f32 %v467_v59, %v1098_v8  ;;  %s1447_s30 = sld [smem:[#allocation6 + $0x78]]  ;;  %v1450_v46 = vmul.f32 %v476_v39, %v1107_v12  ;;  %v491_v59 = vstv %s1245_s4  ;;  %1890 = vst [vmem:[#allocation76_spill] sm:$0xff] %v1460_v1  ;;  %v502_v39 = vstv %s1277_s18 }
  0xf5   :  { %s1457_s24 = sld [smem:[#allocation6 + $0x79]]  ;;  %1891 = vst [vmem:[#allocation77_spill] sm:$0xff] %v1463_v22  ;;  %v1478_v62 = vmul.f32 %v491_v59, %v1138_v27  ;;  %v514_v22 = vstv %s1315_s21  ;;  %v517_v1 = vstv %s1327_s6  ;;  %v1491_v2 = vmul.f32 %v502_v39, %v1100_v9 }
  0xf6   :  { %1888 = vst [vmem:[#allocation74_spill] sm:$0xff] %v1450_v46  ;;  %s1467_s0 = sld [smem:[#allocation6 + $0x7a]]  ;;  %v508_v46 = vstv %s1295_s2  ;;  %v523_v59 = vstv %s1347_s16  ;;  %v1498_v56 = vmul.f32 %v505_v26, %v1105_v11  ;;  %v1504_v0 = vmul.f32 %v511_v21, %v1112_v15 }
  0xf7   :  { %s1475_s29 = sld [smem:[#allocation6 + $0x7b]]  ;;  %1893 = vst [vmem:[#allocation79_spill] sm:$0xff] %v1478_v62  ;;  %1894 = vst [vmem:[#allocation80_spill] sm:$0xff] %v1491_v2  ;;  %v1501_v62 = vmul.f32 %v508_v46, %v1107_v12  ;;  %v527_v39 = vstv %s1355_s17  ;;  %v1510_v2 = vmul.f32 %v514_v22, %v1114_v16  ;;  %v1513_v58 = vmul.f32 %v517_v1, %v1120_v19 }
  0xf8   :  { %s1485_s1 = sld [smem:[#allocation6 + $0x7c]]  ;;  %1895 = vst [vmem:[#allocation81_spill] sm:$0xff] %v1498_v56  ;;  %1897 = vst [vmem:[#allocation83_spill] sm:$0xff] %v1504_v0  ;;  %v531_v26 = vstv %s1365_s20  ;;  %v534_v56 = vstv %s1375_s23  ;;  %v1520_v46 = vmul.f32 %v520_v36, %v1129_v23  ;;  %v1523_v21 = vmul.f32 %v523_v59, %v1138_v27 }
  0xf9   :  { %s1495_s5 = sld [smem:[#allocation6 + $0x82]]  ;;  %1896 = vst [vmem:[#allocation82_spill] sm:$0xff] %v1501_v62  ;;  %1898 = vst [vmem:[#allocation84_spill] sm:$0xff] %v1510_v2  ;;  %v537_v0 = vstv %s1387_s28  ;;  %v540_v22 = vstv %s1397_s3  ;;  %v1530_v1 = vmul.f32 %v527_v39, %v1094_v6  ;;  %v546_v2 = vstv %s1415_s9 }
  0xfa   :  { %s1507_s4 = sld [smem:[#allocation6 + $0x83]]  ;;  %1899 = vst [vmem:[#allocation85_spill] sm:$0xff] %v1513_v58  ;;  %1900 = vst [vmem:[#allocation86_spill] sm:$0xff] %v1520_v46  ;;  %v543_v58 = vstv %s1407_s25  ;;  %v549_v62 = vstv %s1425_s26  ;;  %v1538_v36 = vmul.f32 %v531_v26, %v1098_v8  ;;  %v1541_v59 = vmul.f32 %v534_v56, %v1100_v9 }
  0xfb   :  { %s1517_s13 = sld [smem:[#allocation6 + $0x84]]  ;;  %1901 = vst [vmem:[#allocation87_spill] sm:$0xff] %v1523_v21  ;;  %1902 = vst [vmem:[#allocation88_spill] sm:$0xff] %v1530_v1  ;;  %v552_v27 = vstv %s1435_s12  ;;  %v559_v21 = vstv %s1447_s30  ;;  %v1548_v39 = vmul.f32 %v537_v0, %v1105_v11  ;;  %v1551_v46 = vmul.f32 %v540_v22, %v1107_v12 }
  0xfc   :  { %s1527_s15 = sld [smem:[#allocation6 + $0x85]]  ;;  %1903 = vst [vmem:[#allocation89_spill] sm:$0xff] %v1538_v36  ;;  %1904 = vst [vmem:[#allocation90_spill] sm:$0xff] %v1541_v59  ;;  %v563_v1 = vstv %s1457_s24  ;;  %v566_v61 = vstv %s1467_s0  ;;  %v1559_v56 = vmul.f32 %v543_v58, %v1112_v15  ;;  %v1562_v59 = vmul.f32 %v546_v2, %v1114_v16  ;;  %s852_s24 = smov [#allocation7]  }
  0xfd   :  { %s1535_s18 = sld [smem:[#allocation6 + $0x86]]  ;;  %1905 = vst [vmem:[#allocation91_spill] sm:$0xff] %v1548_v39  ;;  %1906 = vst [vmem:[#allocation92_spill] sm:$0xff] %v1551_v46  ;;  %v1565_v36 = vmul.f32 %v549_v62, %v1120_v19  ;;  %v1572_v46 = vmul.f32 %v552_v27, %v1129_v23  ;;  %v1575_v39 = vmul.f32 %v559_v21, %v1094_v6  ;;  %s629_s0 = sshll.u32 %s852_s24, 4  ;;  %s630_s0 = int_to_ptr.vmem [resolvable:$true] %s629_s0 }
  0xfe   :  { %s1545_s7 = sld [smem:[#allocation6 + $0x87]]  ;;  %v1580_v62 = vmul.f32 %v563_v1, %v1098_v8  ;;  %p827_p6 = scmp.lt.s32.totalorder %s630_s0, %s630_s0 }
  0xff   :  { %s1555_s2 = sld [smem:[#allocation6 + $0x88]]  ;;  %v273_v26 = vstv %s1495_s5  ;;  %1907 = vst [vmem:[#allocation93_spill] sm:$0xff] %v1565_v36  ;;  %1908 = vst [vmem:[#allocation94_spill] sm:$0xff] %v1572_v46  ;;  %v1583_v36 = vmul.f32 %v566_v61, %v1100_v9  ;;  %v569_v46 = vstv %s1475_s29  ;;  %s822_s29 = scalar_lea.vmem %s630_s0, 128 }
 0x100   :  { %s1567_s14 = sld [smem:[#allocation6 + $0x89]]  ;;  %v274_v0 = vadd.f32 %v273_v26, %v1123_v20  ;;  %v305_v22 = vstv %s1507_s4  ;;  %p823_p5 = scmp.ne.s32.totalorder %s630_s0, %s822_s29 }
 0x101   :  { %v306_v58 = vadd.f32 %v305_v22, %v1181_v44  ;;  %v337_v2 = vstv %s1517_s13  ;;  %v572_v44 = vstv %s1485_s1  ;;  %s1625_s21 = sld [smem:[#allocation6 + $0x7d]]  ;;  %p828_p7 = scmp.lt.s32.totalorder %s822_s29, %s822_s29 }
 0x102   :  { %v277_v20 = vadd.f32 %v1132_v24, %v274_v0  ;;  %v338_v26 = vadd.f32 %v337_v2, %v1230_v63  ;;  %v369_v27 = vstv %s1527_s15  ;;  %s1631_s6 = sld [smem:[#allocation6 + $0x77]] }
 0x103   :  { %v309_v6 = vadd.f32 %v1188_v47, %v306_v58  ;;  %v370_v21 = vadd.f32 %v369_v27, %v1280_v37  ;;  %v401_v23 = vstv %s1535_s18  ;;  %s1637_s27 = sld [smem:[#allocation6 + $0x8a]]  ;;  %v1913_v27 = vld [vmem:[#allocation54_spill] sm:$0xff]  ;;  %p829_p8 = por %p828_p7, %p827_p6 }
 0x104   :  { %v280_v8 = vadd.f32 %v1141_v28, %v277_v20  ;;  %v341_v1 = vadd.f32 %v1238_v4, %v338_v26  ;;  %v402_v9 = vadd.f32 %v401_v23, %v1330_v17  ;;  %v433_v61 = vstv %s1545_s7  ;;  %v1911_v20 = vld [vmem:[#allocation80_spill] sm:$0xff]  ;;  %s1643_s16 = sld [smem:[#allocation6 + $0x8b]] }
 0x105   :  { %v312_v24 = vadd.f32 %v1191_v48, %v309_v6  ;;  %v373_v63 = vadd.f32 %v1283_v38, %v370_v21  ;;  %v434_v0 = vadd.f32 %v433_v61, %v1381_v43  ;;  %v465_v22 = vstv %s1555_s2  ;;  %v1912_v26 = vld [vmem:[#allocation48_spill] sm:$0xff]  ;;  %v1914_v6 = vld [vmem:[#allocation63_spill] sm:$0xff]  ;;  %v1915_v21 = vld [vmem:[#allocation74_spill] sm:$0xff]  ;;  %s1649_s11 = sld [smem:[#allocation6 + $0x8c]]  ;;  %p830_p9 = pnand %p829_p8, %p823_p5 }
 0x106   :  { %v283_v47 = vadd.f32 %v1144_v29, %v280_v8  ;;  %v344_v37 = vadd.f32 %v1241_v5, %v341_v1  ;;  %v405_v58 = vadd.f32 %v1333_v25, %v402_v9  ;;  %v466_v28 = vadd.f32 %v465_v22, %v1431_v7  ;;  %v1916_v8 = vld [vmem:[#allocation51_spill] sm:$0xff]  ;;  %v1918_v61 = vld [vmem:[#allocation69_spill] sm:$0xff]  ;;  %s1655_s17 = sld [smem:[#allocation6 + $0x8d]] }
 0x107   :  { %v315_v4 = vadd.f32 %v1198_v51, %v312_v24  ;;  %v376_v23 = vadd.f32 %v1290_v42, %v373_v63  ;;  %v437_v17 = vadd.f32 %v1384_v45, %v434_v0  ;;  %v497_v48 = vstv %s1567_s14  ;;  %v1917_v1 = vld [vmem:[#allocation59_spill] sm:$0xff]  ;;  %v1919_v63 = vld [vmem:[#allocation81_spill] sm:$0xff]  ;;  %s1661_s8 = sld [smem:[#allocation6 + $0x96]] }
 0x108   :  { %v286_v38 = vadd.f32 %v1150_v31, %v283_v47  ;;  %v347_v43 = vadd.f32 %v1248_v10, %v344_v37  ;;  %v408_v2 = vadd.f32 %v1340_v40, %v405_v58  ;;  %v469_v29 = vadd.f32 %v1438_v34, %v466_v28  ;;  %v1920_v22 = vld [vmem:[#allocation49_spill] sm:$0xff]  ;;  %v1921_v37 = vld [vmem:[#allocation55_spill] sm:$0xff]  ;;  %v1922_v28 = vld [vmem:[#allocation64_spill] sm:$0xff]  ;;  %s1667_s19 = sld [smem:[#allocation6 + $0x8e]] }
 0x109   :  { %v318_v5 = vadd.f32 %v1201_v52, %v315_v4  ;;  %v379_v25 = vadd.f32 %v1298_v50, %v376_v23  ;;  %v440_v7 = vadd.f32 %v1390_v60, %v437_v17  ;;  %v498_v51 = vadd.f32 %v497_v48, %v1481_v57  ;;  %v1910_v57 = vld [vmem:[#allocation68_spill] sm:$0xff]  ;;  %v1923_v23 = vld [vmem:[#allocation75_spill] sm:$0xff]  ;;  %s1673_s20 = sld [smem:[#allocation6 + $0x8f]] }
 0x10a   :  { %v289_v42 = vadd.f32 %v1153_v32, %v286_v38  ;;  %v350_v45 = vadd.f32 %v1251_v13, %v347_v43  ;;  %v411_v31 = vadd.f32 %v1343_v41, %v408_v2  ;;  %v472_v10 = vadd.f32 %v1441_v33, %v469_v29  ;;  %v1909_v33 = vld [vmem:[#allocation58_spill] sm:$0xff]  ;;  %v1924_v48 = vld [vmem:[#allocation52_spill] sm:$0xff]  ;;  %s1679_s22 = sld [smem:[#allocation6 + $0x90]] }
 0x10b   :  { %v321_v40 = vadd.f32 %v1204_v53, %v318_v5  ;;  %v382_v34 = vadd.f32 %v1301_v54, %v379_v25  ;;  %v443_v52 = vadd.f32 %v1393_v14, %v440_v7  ;;  %v501_v50 = vadd.f32 %v1488_v30, %v498_v51  ;;  %v1925_v43 = vld [vmem:[#allocation60_spill] sm:$0xff]  ;;  %v1926_v29 = vld [vmem:[#allocation70_spill] sm:$0xff]  ;;  %s1687_s23 = sld [smem:[#allocation6 + $0x7e]] }
 0x10c   :  { %v292_v60 = vadd.f32 %v1160_v35, %v289_v42  ;;  %v353_v32 = vadd.f32 %v1258_v18, %v350_v45  ;;  %v414_v13 = vadd.f32 %v1350_v49, %v411_v31  ;;  %v475_v41 = vadd.f32 %v1444_v3, %v472_v10  ;;  %v1927_v25 = vld [vmem:[#allocation82_spill] sm:$0xff]  ;;  %v1929_v45 = vld [vmem:[#allocation56_spill] sm:$0xff]  ;;  %v1930_v10 = vld [vmem:[#allocation65_spill] sm:$0xff]  ;;  %s1694_s10 = sld [smem:[#allocation6 + $0x91]] }
 0x10d   :  { %v324_v53 = vadd.f32 %v1210_v55, %v321_v40  ;;  %v385_v54 = vadd.f32 %v1909_v33, %v382_v34  ;;  %v446_v14 = vadd.f32 %v1910_v57, %v443_v52  ;;  %v504_v30 = vadd.f32 %v1911_v20, %v501_v50  ;;  %v1928_v51 = vld [vmem:[#allocation50_spill] sm:$0xff]  ;;  %v1931_v34 = vld [vmem:[#allocation76_spill] sm:$0xff]  ;;  %v1932_v50 = vld [vmem:[#allocation53_spill] sm:$0xff]  ;;  %s1699_s28 = sld [smem:[#allocation6 + $0x7f]] }
 0x10e   :  { %v295_v35 = vadd.f32 %v1912_v26, %v292_v60  ;;  %v356_v18 = vadd.f32 %v1913_v27, %v353_v32  ;;  %v417_v49 = vadd.f32 %v1914_v6, %v414_v13  ;;  %v478_v3 = vadd.f32 %v1915_v21, %v475_v41  ;;  %v1933_v32 = vld [vmem:[#allocation61_spill] sm:$0xff]  ;;  %v1934_v41 = vld [vmem:[#allocation71_spill] sm:$0xff]  ;;  %v1937_v20 = vld [vmem:[#allocation66_spill] sm:$0xff]  ;;  %s1704_s3 = sld [smem:[#allocation6 + $0x92]] }
 0x10f   :  { %v327_v55 = vadd.f32 %v1916_v8, %v324_v53  ;;  %v388_v9 = vadd.f32 %v1917_v1, %v385_v54  ;;  %v449_v24 = vadd.f32 %v1918_v61, %v446_v14  ;;  %v507_v0 = vadd.f32 %v1919_v63, %v504_v30  ;;  %v1935_v33 = vld [vmem:[#allocation83_spill] sm:$0xff]  ;;  %v1936_v57 = vld [vmem:[#allocation57_spill] sm:$0xff]  ;;  %s1709_s25 = sld [smem:[#allocation6 + $0x80]] }
 0x110   :  { %v298_v47 = vadd.f32 %v1920_v22, %v295_v35  ;;  %v359_v58 = vadd.f32 %v1921_v37, %v356_v18  ;;  %v420_v4 = vadd.f32 %v1922_v28, %v417_v49  ;;  %v481_v17 = vadd.f32 %v1923_v23, %v478_v3  ;;  %v1938_v26 = vld [vmem:[#allocation77_spill] sm:$0xff]  ;;  %v1939_v18 = vld [vmem:[#allocation62_spill] sm:$0xff]  ;;  %v1940_v49 = vld [vmem:[#allocation72_spill] sm:$0xff]  ;;  %s1713_s9 = sld [smem:[#allocation6 + $0x81]] }
 0x111   :  { %v330_v38 = vadd.f32 %v1924_v48, %v327_v55  ;;  %v391_v2 = vadd.f32 %v1925_v43, %v388_v9  ;;  %v452_v5 = vadd.f32 %v1926_v29, %v449_v24  ;;  %v510_v7 = vadd.f32 %v1927_v25, %v507_v0  ;;  %v1941_v3 = vld [vmem:[#allocation84_spill] sm:$0xff]  ;;  %v1942_v9 = vld [vmem:[#allocation67_spill] sm:$0xff]  ;;  %v1943_v22 = vld [vmem:[#allocation85_spill] sm:$0xff]  ;;  %s1718_s26 = sld [smem:[#allocation6 + $0x93]] }
 0x112   :  { %v301_v42 = vadd.f32 %v1928_v51, %v298_v47  ;;  %v362_v31 = vadd.f32 %v1929_v45, %v359_v58  ;;  %v423_v40 = vadd.f32 %v1930_v10, %v420_v4  ;;  %v484_v52 = vadd.f32 %v1931_v34, %v481_v17  ;;  %v1944_v37 = vld [vmem:[#allocation88_spill] sm:$0xff]  ;;  %v1945_v28 = vld [vmem:[#allocation78_spill] sm:$0xff]  ;;  %s1734_s12 = sld [smem:[#allocation6 + $0x94]] }
 0x113   :  { %v333_v60 = vadd.f32 %v1932_v50, %v330_v38  ;;  %v394_v13 = vadd.f32 %v1933_v32, %v391_v2  ;;  %v455_v53 = vadd.f32 %v1934_v41, %v452_v5  ;;  %v513_v54 = vadd.f32 %v1935_v33, %v510_v7  ;;  %v1947_v38 = vld [vmem:[#allocation89_spill] sm:$0xff]  ;;  %v1948_v7 = vld [vmem:[#allocation86_spill] sm:$0xff]  ;;  %s787_s30 = sld [smem:[#allocation6 + $0x95]] }
 0x114   :  { %v365_v14 = vadd.f32 %v1936_v57, %v362_v31  ;;  %v426_v30 = vadd.f32 %v1937_v20, %v423_v40  ;;  %v487_v35 = vadd.f32 %v1938_v26, %v484_v52  ;;  %v575_v27 = vstv %s1625_s21 }
 0x115   :  { %v397_v6 = vadd.f32 %v1939_v18, %v394_v13  ;;  %v458_v21 = vadd.f32 %v1940_v49, %v455_v53  ;;  %v516_v8 = vadd.f32 %v1941_v3, %v513_v54  ;;  %v570_v55 = vmul.f32 %v569_v46, %v1105_v11 }
 0x116   :  { %v302_v1 = vmax.f32 %v301_v42, 0.0  ;;  %v429_v61 = vadd.f32 %v1942_v9, %v426_v30  ;;  %v529_v24 = vstv %s1637_s27  ;;  %v573_v63 = vmul.f32 %v572_v44, %v1107_v12  ;;  %v1946_v44 = vld [vmem:[#allocation73_spill] sm:$0xff]  ;;  %v1949_v42 = vld [vmem:[#allocation90_spill] sm:$0xff]  ;;  %v1953_v30 = vld [vmem:[#allocation92_spill] sm:$0xff] }
 0x117   :  { %v334_v0 = vmax.f32 %v333_v60, 0.0  ;;  %v519_v47 = vadd.f32 %v1943_v22, %v516_v8  ;;  %v530_v58 = vadd.f32 %v529_v24, %v1944_v37  ;;  %v576_v11 = vmul.f32 %v575_v27, %v1112_v15  ;;  %v1951_v60 = vld [vmem:[#allocation91_spill] sm:$0xff] }
 0x118   :  { %v366_v46 = vmax.f32 %v365_v14, 0.0  ;;  %v490_v4 = vadd.f32 %v1945_v28, %v487_v35  ;;  %v561_v23 = vstv %s1643_s16  ;;  %v591_v17 = vstv %s1649_s11  ;;  %v1952_v14 = vld [vmem:[#allocation87_spill] sm:$0xff] }
 0x119   :  { %v398_v12 = vmax.f32 %v397_v6, 0.0  ;;  %v461_v48 = vadd.f32 %v1946_v44, %v458_v21  ;;  %v533_v43 = vadd.f32 %v1947_v38, %v530_v58  ;;  %v562_v2 = vadd.f32 %v561_v23, %v1575_v39  ;;  %v1950_v39 = vld [vmem:[#allocation79_spill] sm:$0xff]  ;;  %v1957_v38 = vld [vmem:[#allocation94_spill] sm:$0xff] }
 0x11a   :  { %v430_v15 = vmax.f32 %v429_v61, 0.0  ;;  %v592_v29 = vmul.f32 %v591_v17, %v302_v1  ;;  %v593_v5 = vstv %s1661_s8  ;;  %v595_v25 = vstv %s1655_s17 }
 0x11b   :  { %v522_v51 = vadd.f32 %v1948_v7, %v519_v47  ;;  %v536_v45 = vadd.f32 %v1949_v42, %v533_v43  ;;  %v565_v31 = vadd.f32 %v1580_v62, %v562_v2  ;;  %v596_v10 = vmul.f32 %v595_v25, %v334_v0 }
 0x11c   :  { %v493_v40 = vadd.f32 %v1950_v39, %v490_v4  ;;  %v594_v34 = vadd.f32 %v593_v5, %v592_v29  ;;  %v598_v52 = vstv %s1667_s19  ;;  %v601_v50 = vstv %s1673_s20  ;;  %v1955_v4 = vld [vmem:[#allocation47_spill] sm:$0xff] }
 0x11d   :  { %v539_v32 = vadd.f32 %v1951_v60, %v536_v45  ;;  %v568_v13 = vadd.f32 %v1583_v36, %v565_v31  ;;  %v599_v41 = vmul.f32 %v598_v52, %v366_v46  ;;  %v604_v53 = vstv %s1679_s22 }
 0x11e   :  { %v462_v33 = vmax.f32 %v461_v48, 0.0  ;;  %v578_v54 = vstv %s1687_s23  ;;  %v597_v62 = vadd.f32 %v596_v10, %v594_v34  ;;  %v602_v57 = vmul.f32 %v601_v50, %v398_v12  ;;  %v1956_v12 = vld [vmem:[#allocation46_spill] sm:$0xff] }
 0x11f   :  { %v525_v20 = vadd.f32 %v1952_v14, %v522_v51  ;;  %v542_v26 = vadd.f32 %v1953_v30, %v539_v32  ;;  %v571_v35 = vadd.f32 %v570_v55, %v568_v13  ;;  %v607_v27 = vstv %s1694_s10 }
 0x120   :  { %v494_v18 = vmax.f32 %v493_v40, 0.0  ;;  %v581_v6 = vstv %s1699_s28  ;;  %v600_v49 = vadd.f32 %v599_v41, %v597_v62  ;;  %v605_v36 = vmul.f32 %v604_v53, %v430_v15 }
 0x121   :  { %v545_v21 = vadd.f32 %v1559_v56, %v542_v26  ;;  %v574_v3 = vadd.f32 %v573_v63, %v571_v35  ;;  %v579_v8 = vmul.f32 %v578_v54, %v1114_v16  ;;  %v610_v1 = vstv %s1704_s3  ;;  %v1954_v16 = vld [vmem:[#allocation93_spill] sm:$0xff] }
 0x122   :  { %v555_v9 = vstv %s1631_s6  ;;  %v584_v61 = vstv %s1709_s25  ;;  %v603_v24 = vadd.f32 %v602_v57, %v600_v49  ;;  %v608_v0 = vmul.f32 %v607_v27, %v462_v33 }
 0x123   :  { %v526_v55 = vmax.f32 %v525_v20, 0.0  ;;  %v548_v22 = vadd.f32 %v1562_v59, %v545_v21  ;;  %v577_v47 = vadd.f32 %v576_v11, %v574_v3  ;;  %v582_v37 = vmul.f32 %v581_v6, %v1120_v19 }
 0x124   :  { %v587_v58 = vstv %s1713_s9  ;;  %v606_v56 = vadd.f32 %v605_v36, %v603_v24  ;;  %v611_v63 = vmul.f32 %v610_v1, %v494_v18  ;;  %v613_v46 = vstv %s1718_s26 }
 0x125   :  { %v551_v28 = vadd.f32 %v1954_v16, %v548_v22  ;;  %v556_v23 = vmul.f32 %v555_v9, %v1955_v4  ;;  %v580_v17 = vadd.f32 %v579_v8, %v577_v47  ;;  %v585_v44 = vmul.f32 %v584_v61, %v1956_v12 }
 0x126   :  { %v609_v48 = vadd.f32 %v608_v0, %v606_v56  ;;  %v588_v11 = vmul.f32 %v587_v58, %v1955_v4  ;;  %v614_v19 = vmul.f32 %v613_v46, %v526_v55  ;;  %v616_v5 = vstv %s1734_s12 }
 0x127   :  { %v554_v43 = vadd.f32 %v1957_v38, %v551_v28  ;;  %v583_v59 = vadd.f32 %v582_v37, %v580_v17  ;;  %v619_v42 = vstv %s787_s30 }
 0x128   :  { %v612_v2 = vadd.f32 %v611_v63, %v609_v48 }
 0x129   :  { %v557_v15 = vadd.f32 %v556_v23, %v554_v43  ;;  %v586_v29 = vadd.f32 %v585_v44, %v583_v59 }
 0x12a   :  { %v615_v51 = vadd.f32 %v614_v19, %v612_v2 }
 0x12b   :  { %v558_v25 = vmax.f32 %v557_v15, 0.0  ;;  %v589_v7 = vadd.f32 %v588_v11, %v586_v29 }
 0x12d   :  { %v590_v45 = vmax.f32 %v589_v7, 0.0  ;;  %v617_v31 = vmul.f32 %v616_v5, %v558_v25 }
 0x12f   :  { %v618_v10 = vadd.f32 %v617_v31, %v615_v51  ;;  %v620_v39 = vmul.f32 %v619_v42, %v590_v45 }
 0x131   :  { %v621_v40 = vadd.f32 %v620_v39, %v618_v10 }
 0x133   :  { %622 = vst [vmem:[#allocation7] sm:$0xff] %v621_v40 }
 0x134   :  { %833 = shalt.err (!%p830_p9)
}
 0x135   :  { %s1958_s4 = sld [smem:[#allocation95_spill]] }
 0x13b   :  { %632 = dma.vmem_to_hbm [thread:$0]  %s630_s0, 128, %s1958_s4, [#allocation4]  }
 0x13c   :  { %846 = dma.done.wait [#allocation4], 128  }
 0x13d   :  { %847 = vsyncadd [#allocation4], 4294967168 }
 0x13e   :  { %636 = vsyncpa [#allocation3], 1 }
 0x13f   :  { %637 = vsyncpa [#allocation4], 1 }
 0x140   :  { %638 = vsyncpa [#allocation5], 1 }

</bundles_post_ra>
